<compile_context>
chip_gen: v6e
topology: v6e:2x2x1
jax: 0.10.0
libtpu: 0.0.40
codegen_flags: <defaults>
</compile_context>

<pallas_src>
from functools import partial

import jax
import jax.numpy as jnp
from jax.experimental import pallas as pl
from jax.experimental.pallas import tpu as pltpu


def _kn2row_accumulate(p_all, mask_ref, cout, W, M):
    """Sum the 9 per-tap partial products, each shifted along the flattened (lane)
    pixel axis to its destination pixel and masked at the image boundary.

    p_all   : (9*cout, M)  partial products, rows grouped per tap (dy, dx)
    mask_ref: (9, M)       0/1 validity mask per tap (precomputed, "SAME" zero pad)
    """
    acc = None
    for t in range(9):
        sy, sx = t // 3 - 1, t % 3 - 1          # tap offset relative to the center
        part = p_all[t * cout:(t + 1) * cout, :]
        delta = sy * W + sx                     # source pixel = dest pixel + delta
        if delta != 0:
            # out[:, p] = part[:, (p + delta) mod M]  (static lane rotation)
            s = (-delta) % M
            part = jnp.concatenate([part[:, M - s:], part[:, :M - s]], axis=1)
        if (sy, sx) != (0, 0):
            part = part * mask_ref[t:t + 1, :]  # zero out-of-image contributions
        acc = part if acc is None else acc + part
    return acc


def _predict_block_kernel(x_ref, w1_ref, scale_ref, shift_ref, w23_ref, b23_ref,
                          mask_ref, out_ref, *, W):
    # x_ref    : (1, 64, M) f32   input feature map (channels on sublanes, pixels on lanes)
    # w1_ref   : (288, 64)  f32   conv1 weights, rows = (tap, cout)   [kn2row layout]
    # scale    : (32, 1)    f32   folded BN scale
    # shift    : (32, 1)    f32   folded BN shift (includes conv1 bias)
    # w23_ref  : (18, 32)   f32   [smaps | edges] weights, rows = (tap, {s, e})
    # b23_ref  : (2, 1)     f32   [smaps, edges] biases
    # mask_ref : (9, M)     f32   0/1 per-tap boundary-validity masks
    # out_ref  : (1, 2, M)  f32   lane-dense combined output [smaps; edges]
    M = x_ref.shape[2]
    C1 = scale_ref.shape[0]

    # ---- conv1 (64 -> 32): all 9 taps' partial products in ONE MXU matmul ----
    p1 = jnp.dot(w1_ref[...], x_ref[0], preferred_element_type=jnp.float32)  # (288, M)
    acc1 = _kn2row_accumulate(p1, mask_ref, C1, W, M)                        # (32, M)

    # ---- folded BatchNorm + ReLU ----
    hid = jnp.maximum(acc1 * scale_ref[...] + shift_ref[...], 0.0)           # (32, M)

    # ---- smaps & edges convs (32 -> 1 each), fused into one (18, 32) @ (32, M) ----
    p2 = jnp.dot(w23_ref[...], hid, preferred_element_type=jnp.float32)      # (18, M)
    acc2 = _kn2row_accumulate(p2, mask_ref, 2, W, M)                         # (2, M)

    # Lane-dense store (M multiple of 128): no transpose, no masked stores.
    out_ref[0] = acc2 + b23_ref[...]


def predict_block(x_nchw, params):
    """PredictBlock forward. x_nchw: (B, 64, H, W) f32 -> (smaps, edges), each (B,1,H,W)."""
    w1, b1, gamma, beta, rmean, rvar, eps, w2, b2, w3, b3 = params
    B, Cin, H, W = x_nchw.shape
    M = H * W
    C1 = w1.shape[3]

    # NCHW kept as-is: (B, C, H, W) -> (B, C, H*W) is a free reshape.  No transpose,
    # no jnp.pad -- the halo is handled by the in-kernel shift-accumulate masks.
    x_flat = x_nchw.reshape(B, Cin, M).astype(jnp.float32)

    # Fold eval-mode BatchNorm (+ conv1 bias) into a per-channel scale / shift.
    inv = gamma / jnp.sqrt(rvar + eps)
    scale = inv.reshape(C1, 1).astype(jnp.float32)
    shift = (beta + (b1 - rmean) * inv).reshape(C1, 1).astype(jnp.float32)

    # kn2row weight layouts: rows ordered (tap, cout); columns = input channels.
    w1_big = jnp.transpose(w1, (0, 1, 3, 2)).reshape(9 * C1, Cin).astype(jnp.float32)
    w23 = jnp.concatenate([w2, w3], axis=-1)                                  # (3,3,32,2)
    w23_big = jnp.transpose(w23, (0, 1, 3, 2)).reshape(9 * 2, C1).astype(jnp.float32)
    b23 = jnp.stack([b2, b3]).reshape(2, 1).astype(jnp.float32)

    # Per-tap 0/1 boundary masks over the flattened pixel axis ("SAME" zero padding).
    yy, xx = jnp.meshgrid(jnp.arange(H), jnp.arange(W), indexing="ij")
    rows = []
    for t in range(9):
        sy, sx = t // 3 - 1, t % 3 - 1
        valid = (yy + sy >= 0) & (yy + sy < H) & (xx + sx >= 0) & (xx + sx < W)
        rows.append(valid.reshape(-1))
    tap_mask = jnp.stack(rows).astype(jnp.float32)                            # (9, M)

    out = pl.pallas_call(
        partial(_predict_block_kernel, W=W),
        out_shape=jax.ShapeDtypeStruct((B, 2, M), jnp.float32),
        grid=(B,),
        in_specs=[
            pl.BlockSpec((1, Cin, M), lambda b: (b, 0, 0)),
            pl.BlockSpec((9 * C1, Cin), lambda b: (0, 0)),
            pl.BlockSpec((C1, 1), lambda b: (0, 0)),
            pl.BlockSpec((C1, 1), lambda b: (0, 0)),
            pl.BlockSpec((9 * 2, C1), lambda b: (0, 0)),
            pl.BlockSpec((2, 1), lambda b: (0, 0)),
            pl.BlockSpec((9, M), lambda b: (0, 0)),
        ],
        out_specs=pl.BlockSpec((1, 2, M), lambda b: (b, 0, 0)),
        compiler_params=pltpu.CompilerParams(dimension_semantics=("parallel",)),
    )(x_flat, w1_big, scale, shift, w23_big, b23, tap_mask)

    smaps = out[:, 0, :].reshape(B, 1, H, W)
    edges = out[:, 1, :].reshape(B, 1, H, W)
    return smaps, edges


def _kaiming_hwio(key, kh, kw, cin, cout):
    # kaiming_normal_(mode='fan_in', nonlinearity='relu'): std = sqrt(2 / (cin*kh*kw))
    std = (2.0 / (cin * kh * kw)) ** 0.5
    return std * jax.random.normal(key, (kh, kw, cin, cout), dtype=jnp.float32)


def _reference_f32(x_nchw, params):
    """Plain-JAX f32 reference (lax.conv, NCHW), matching the PyTorch module."""
    w1, b1, gamma, beta, rmean, rvar, eps, w2, b2, w3, b3 = params
    dn = ("NCHW", "HWIO", "NCHW")
    conv = lambda a, w: jax.lax.conv_general_dilated(
        a, w, (1, 1), "SAME", dimension_numbers=dn,
        precision=jax.lax.Precision.HIGHEST)
    c = lambda v: v.reshape(1, -1, 1, 1)
    h = conv(x_nchw, w1) + c(b1)
    h = (h - c(rmean)) / jnp.sqrt(c(rvar) + eps) * c(gamma) + c(beta)
    h = jnp.maximum(h, 0.0)
    s = conv(h, w2) + c(b2)
    e = conv(h, w3) + c(b3)
    return s, e


if __name__ == "__main__":
    key = jax.random.PRNGKey(0)
    k_x, k_w1, k_w2, k_w3, k_m, k_v = jax.random.split(key, 6)

    B, Cin, H, W = 2, 64, 16, 16
    x = jax.random.normal(k_x, (B, Cin, H, W), dtype=jnp.float32)

    # Parameters following weight_init (conv: kaiming fan_in; biases 0; BN affine 1/0).
    # Running stats are given non-trivial values so the BN fold is actually exercised.
    w1 = _kaiming_hwio(k_w1, 3, 3, Cin, 32)
    b1 = jnp.zeros((32,), jnp.float32)
    gamma = jnp.ones((32,), jnp.float32)
    beta = jnp.zeros((32,), jnp.float32)
    rmean = 0.1 * jax.random.normal(k_m, (32,), dtype=jnp.float32)
    rvar = 1.0 + 0.1 * jax.random.uniform(k_v, (32,), dtype=jnp.float32)
    eps = 1e-5
    w2 = _kaiming_hwio(k_w2, 3, 3, 32, 1)
    b2 = jnp.zeros((1,), jnp.float32)
    w3 = _kaiming_hwio(k_w3, 3, 3, 32, 1)
    b3 = jnp.zeros((1,), jnp.float32)

    params = (w1, b1, gamma, beta, rmean, rvar, eps, w2, b2, w3, b3)

    smaps, edges = jax.jit(predict_block)(x, params)
    jax.block_until_ready((smaps, edges))

    assert smaps.shape == (B, 1, H, W) and edges.shape == (B, 1, H, W)

    s_ref, e_ref = _reference_f32(x, params)
    assert jnp.allclose(smaps, s_ref, atol=5e-3, rtol=5e-3), \
        float(jnp.max(jnp.abs(smaps - s_ref)))
    assert jnp.allclose(edges, e_ref, atol=5e-3, rtol=5e-3), \
        float(jnp.max(jnp.abs(edges - e_ref)))

    print("KERNEL_OK")
</pallas_src>

<mosaic_0001>
module attributes {stable_mosaic.version = 11 : i64} {
  func.func @_predict_block_kernel(%arg0: i32, %arg1: memref<1x64x256xf32, #tpu.memory_space<vmem>>, %arg2: memref<288x64xf32, #tpu.memory_space<vmem>>, %arg3: memref<32x1xf32, #tpu.memory_space<vmem>>, %arg4: memref<32x1xf32, #tpu.memory_space<vmem>>, %arg5: memref<18x32xf32, #tpu.memory_space<vmem>>, %arg6: memref<2x1xf32, #tpu.memory_space<vmem>>, %arg7: memref<9x256xf32, #tpu.memory_space<vmem>>, %arg8: memref<1x2x256xf32, #tpu.memory_space<vmem>>) attributes {dimension_semantics = [#tpu.dimension_semantics<parallel>], iteration_bounds = array<i64: 2>, scalar_prefetch = 0 : i64, scratch_operands = 0 : i64, tpu.core_type = #tpu.core_type<tc>, window_params = [{transform_indices = @transform_0, window_bounds = array<i64: 1, 64, 256>}, {pipeline_mode = #tpu.pipeline_mode<synchronous>, transform_indices = @transform_1, window_bounds = array<i64: 288, 64>}, {pipeline_mode = #tpu.pipeline_mode<synchronous>, transform_indices = @transform_2, window_bounds = array<i64: 32, 1>}, {pipeline_mode = #tpu.pipeline_mode<synchronous>, transform_indices = @transform_3, window_bounds = array<i64: 32, 1>}, {pipeline_mode = #tpu.pipeline_mode<synchronous>, transform_indices = @transform_4, window_bounds = array<i64: 18, 32>}, {pipeline_mode = #tpu.pipeline_mode<synchronous>, transform_indices = @transform_5, window_bounds = array<i64: 2, 1>}, {pipeline_mode = #tpu.pipeline_mode<synchronous>, transform_indices = @transform_6, window_bounds = array<i64: 9, 256>}, {transform_indices = @transform_7, window_bounds = array<i64: 1, 2, 256>}]} {
    %c0 = arith.constant 0 : index
    %c0_0 = arith.constant 0 : index
    %0 = vector.load %arg2[%c0, %c0_0] : memref<288x64xf32, #tpu.memory_space<vmem>>, vector<288x64xf32>
    %c0_1 = arith.constant 0 : index
    %c0_2 = arith.constant 0 : index
    %c0_3 = arith.constant 0 : index
    %1 = vector.load %arg1[%c0_1, %c0_2, %c0_3] : memref<1x64x256xf32, #tpu.memory_space<vmem>>, vector<1x64x256xf32>
    %2 = vector.shape_cast %1 : vector<1x64x256xf32> to vector<64x256xf32>
    %cst = arith.constant dense<0.000000e+00> : vector<288x256xf32>
    %3 = tpu.matmul %0, %2, %cst {dimension_numbers = #tpu.dot_dimension_numbers<[1], [0], [0], [1], [0, 0, 1, 1], [], []>} : vector<288x64xf32>, vector<64x256xf32>, vector<288x256xf32> -> vector<288x256xf32>
    %4 = vector.extract_strided_slice %3 {offsets = [0, 0], sizes = [32, 256], strides = [1, 1]} : vector<288x256xf32> to vector<32x256xf32>
    %5 = vector.extract_strided_slice %4 {offsets = [0, 239], sizes = [32, 17], strides = [1, 1]} : vector<32x256xf32> to vector<32x17xf32>
    %6 = vector.extract_strided_slice %4 {offsets = [0, 0], sizes = [32, 239], strides = [1, 1]} : vector<32x256xf32> to vector<32x239xf32>
    %7 = tpu.concatenate %5, %6 in 1 : vector<32x17xf32>, vector<32x239xf32> -> vector<32x256xf32>
    %c0_4 = arith.constant 0 : index
    %c0_5 = arith.constant 0 : index
    %8 = vector.load %arg7[%c0_4, %c0_5] : memref<9x256xf32, #tpu.memory_space<vmem>>, vector<1x256xf32>
    %9 = vector.broadcast %8 : vector<1x256xf32> to vector<32x256xf32>
    %10 = arith.mulf %7, %9 : vector<32x256xf32>
    %11 = vector.extract_strided_slice %3 {offsets = [32, 0], sizes = [32, 256], strides = [1, 1]} : vector<288x256xf32> to vector<32x256xf32>
    %12 = vector.extract_strided_slice %11 {offsets = [0, 240], sizes = [32, 16], strides = [1, 1]} : vector<32x256xf32> to vector<32x16xf32>
    %13 = vector.extract_strided_slice %11 {offsets = [0, 0], sizes = [32, 240], strides = [1, 1]} : vector<32x256xf32> to vector<32x240xf32>
    %14 = tpu.concatenate %12, %13 in 1 : vector<32x16xf32>, vector<32x240xf32> -> vector<32x256xf32>
    %c1 = arith.constant 1 : index
    %c0_6 = arith.constant 0 : index
    %15 = vector.load %arg7[%c1, %c0_6] : memref<9x256xf32, #tpu.memory_space<vmem>>, vector<1x256xf32>
    %16 = vector.broadcast %15 : vector<1x256xf32> to vector<32x256xf32>
    %17 = arith.mulf %14, %16 : vector<32x256xf32>
    %18 = arith.addf %10, %17 : vector<32x256xf32>
    %19 = vector.extract_strided_slice %3 {offsets = [64, 0], sizes = [32, 256], strides = [1, 1]} : vector<288x256xf32> to vector<32x256xf32>
    %20 = vector.extract_strided_slice %19 {offsets = [0, 241], sizes = [32, 15], strides = [1, 1]} : vector<32x256xf32> to vector<32x15xf32>
    %21 = vector.extract_strided_slice %19 {offsets = [0, 0], sizes = [32, 241], strides = [1, 1]} : vector<32x256xf32> to vector<32x241xf32>
    %22 = tpu.concatenate %20, %21 in 1 : vector<32x15xf32>, vector<32x241xf32> -> vector<32x256xf32>
    %c2 = arith.constant 2 : index
    %c0_7 = arith.constant 0 : index
    %23 = vector.load %arg7[%c2, %c0_7] : memref<9x256xf32, #tpu.memory_space<vmem>>, vector<1x256xf32>
    %24 = vector.broadcast %23 : vector<1x256xf32> to vector<32x256xf32>
    %25 = arith.mulf %22, %24 : vector<32x256xf32>
    %26 = arith.addf %18, %25 : vector<32x256xf32>
    %27 = vector.extract_strided_slice %3 {offsets = [96, 0], sizes = [32, 256], strides = [1, 1]} : vector<288x256xf32> to vector<32x256xf32>
    %28 = vector.extract_strided_slice %27 {offsets = [0, 255], sizes = [32, 1], strides = [1, 1]} : vector<32x256xf32> to vector<32x1xf32>
    %29 = vector.extract_strided_slice %27 {offsets = [0, 0], sizes = [32, 255], strides = [1, 1]} : vector<32x256xf32> to vector<32x255xf32>
    %30 = tpu.concatenate %28, %29 in 1 : vector<32x1xf32>, vector<32x255xf32> -> vector<32x256xf32>
    %c3 = arith.constant 3 : index
    %c0_8 = arith.constant 0 : index
    %31 = vector.load %arg7[%c3, %c0_8] : memref<9x256xf32, #tpu.memory_space<vmem>>, vector<1x256xf32>
    %32 = vector.broadcast %31 : vector<1x256xf32> to vector<32x256xf32>
    %33 = arith.mulf %30, %32 : vector<32x256xf32>
    %34 = arith.addf %26, %33 : vector<32x256xf32>
    %35 = vector.extract_strided_slice %3 {offsets = [128, 0], sizes = [32, 256], strides = [1, 1]} : vector<288x256xf32> to vector<32x256xf32>
    %36 = arith.addf %34, %35 : vector<32x256xf32>
    %37 = vector.extract_strided_slice %3 {offsets = [160, 0], sizes = [32, 256], strides = [1, 1]} : vector<288x256xf32> to vector<32x256xf32>
    %38 = vector.extract_strided_slice %37 {offsets = [0, 1], sizes = [32, 255], strides = [1, 1]} : vector<32x256xf32> to vector<32x255xf32>
    %39 = vector.extract_strided_slice %37 {offsets = [0, 0], sizes = [32, 1], strides = [1, 1]} : vector<32x256xf32> to vector<32x1xf32>
    %40 = tpu.concatenate %38, %39 in 1 : vector<32x255xf32>, vector<32x1xf32> -> vector<32x256xf32>
    %c5 = arith.constant 5 : index
    %c0_9 = arith.constant 0 : index
    %41 = vector.load %arg7[%c5, %c0_9] : memref<9x256xf32, #tpu.memory_space<vmem>>, vector<1x256xf32>
    %42 = vector.broadcast %41 : vector<1x256xf32> to vector<32x256xf32>
    %43 = arith.mulf %40, %42 : vector<32x256xf32>
    %44 = arith.addf %36, %43 : vector<32x256xf32>
    %45 = vector.extract_strided_slice %3 {offsets = [192, 0], sizes = [32, 256], strides = [1, 1]} : vector<288x256xf32> to vector<32x256xf32>
    %46 = vector.extract_strided_slice %45 {offsets = [0, 15], sizes = [32, 241], strides = [1, 1]} : vector<32x256xf32> to vector<32x241xf32>
    %47 = vector.extract_strided_slice %45 {offsets = [0, 0], sizes = [32, 15], strides = [1, 1]} : vector<32x256xf32> to vector<32x15xf32>
    %48 = tpu.concatenate %46, %47 in 1 : vector<32x241xf32>, vector<32x15xf32> -> vector<32x256xf32>
    %c6 = arith.constant 6 : index
    %c0_10 = arith.constant 0 : index
    %49 = vector.load %arg7[%c6, %c0_10] : memref<9x256xf32, #tpu.memory_space<vmem>>, vector<1x256xf32>
    %50 = vector.broadcast %49 : vector<1x256xf32> to vector<32x256xf32>
    %51 = arith.mulf %48, %50 : vector<32x256xf32>
    %52 = arith.addf %44, %51 : vector<32x256xf32>
    %53 = vector.extract_strided_slice %3 {offsets = [224, 0], sizes = [32, 256], strides = [1, 1]} : vector<288x256xf32> to vector<32x256xf32>
    %54 = vector.extract_strided_slice %53 {offsets = [0, 16], sizes = [32, 240], strides = [1, 1]} : vector<32x256xf32> to vector<32x240xf32>
    %55 = vector.extract_strided_slice %53 {offsets = [0, 0], sizes = [32, 16], strides = [1, 1]} : vector<32x256xf32> to vector<32x16xf32>
    %56 = tpu.concatenate %54, %55 in 1 : vector<32x240xf32>, vector<32x16xf32> -> vector<32x256xf32>
    %c7 = arith.constant 7 : index
    %c0_11 = arith.constant 0 : index
    %57 = vector.load %arg7[%c7, %c0_11] : memref<9x256xf32, #tpu.memory_space<vmem>>, vector<1x256xf32>
    %58 = vector.broadcast %57 : vector<1x256xf32> to vector<32x256xf32>
    %59 = arith.mulf %56, %58 : vector<32x256xf32>
    %60 = arith.addf %52, %59 : vector<32x256xf32>
    %61 = vector.extract_strided_slice %3 {offsets = [256, 0], sizes = [32, 256], strides = [1, 1]} : vector<288x256xf32> to vector<32x256xf32>
    %62 = vector.extract_strided_slice %61 {offsets = [0, 17], sizes = [32, 239], strides = [1, 1]} : vector<32x256xf32> to vector<32x239xf32>
    %63 = vector.extract_strided_slice %61 {offsets = [0, 0], sizes = [32, 17], strides = [1, 1]} : vector<32x256xf32> to vector<32x17xf32>
    %64 = tpu.concatenate %62, %63 in 1 : vector<32x239xf32>, vector<32x17xf32> -> vector<32x256xf32>
    %c8 = arith.constant 8 : index
    %c0_12 = arith.constant 0 : index
    %65 = vector.load %arg7[%c8, %c0_12] : memref<9x256xf32, #tpu.memory_space<vmem>>, vector<1x256xf32>
    %66 = vector.broadcast %65 : vector<1x256xf32> to vector<32x256xf32>
    %67 = arith.mulf %64, %66 : vector<32x256xf32>
    %68 = arith.addf %60, %67 : vector<32x256xf32>
    %c0_13 = arith.constant 0 : index
    %c0_14 = arith.constant 0 : index
    %69 = vector.load %arg3[%c0_13, %c0_14] : memref<32x1xf32, #tpu.memory_space<vmem>>, vector<32x1xf32>
    %70 = vector.broadcast %69 : vector<32x1xf32> to vector<32x256xf32>
    %71 = arith.mulf %68, %70 : vector<32x256xf32>
    %c0_15 = arith.constant 0 : index
    %c0_16 = arith.constant 0 : index
    %72 = vector.load %arg4[%c0_15, %c0_16] : memref<32x1xf32, #tpu.memory_space<vmem>>, vector<32x1xf32>
    %73 = vector.broadcast %72 : vector<32x1xf32> to vector<32x256xf32>
    %74 = arith.addf %71, %73 : vector<32x256xf32>
    %cst_17 = arith.constant 0.000000e+00 : f32
    %75 = vector.broadcast %cst_17 : f32 to vector<32x256xf32>
    %76 = arith.maximumf %74, %75 : vector<32x256xf32>
    %c0_18 = arith.constant 0 : index
    %c0_19 = arith.constant 0 : index
    %77 = vector.load %arg5[%c0_18, %c0_19] : memref<18x32xf32, #tpu.memory_space<vmem>>, vector<18x32xf32>
    %cst_20 = arith.constant dense<0.000000e+00> : vector<18x256xf32>
    %78 = tpu.matmul %77, %76, %cst_20 {dimension_numbers = #tpu.dot_dimension_numbers<[1], [0], [0], [1], [0, 0, 1, 1], [], []>} : vector<18x32xf32>, vector<32x256xf32>, vector<18x256xf32> -> vector<18x256xf32>
    %79 = vector.extract_strided_slice %78 {offsets = [0, 0], sizes = [2, 256], strides = [1, 1]} : vector<18x256xf32> to vector<2x256xf32>
    %80 = vector.extract_strided_slice %79 {offsets = [0, 239], sizes = [2, 17], strides = [1, 1]} : vector<2x256xf32> to vector<2x17xf32>
    %81 = vector.extract_strided_slice %79 {offsets = [0, 0], sizes = [2, 239], strides = [1, 1]} : vector<2x256xf32> to vector<2x239xf32>
    %82 = tpu.concatenate %80, %81 in 1 : vector<2x17xf32>, vector<2x239xf32> -> vector<2x256xf32>
    %c0_21 = arith.constant 0 : index
    %c0_22 = arith.constant 0 : index
    %83 = vector.load %arg7[%c0_21, %c0_22] : memref<9x256xf32, #tpu.memory_space<vmem>>, vector<1x256xf32>
    %84 = vector.broadcast %83 : vector<1x256xf32> to vector<2x256xf32>
    %85 = arith.mulf %82, %84 : vector<2x256xf32>
    %86 = vector.extract_strided_slice %78 {offsets = [2, 0], sizes = [2, 256], strides = [1, 1]} : vector<18x256xf32> to vector<2x256xf32>
    %87 = vector.extract_strided_slice %86 {offsets = [0, 240], sizes = [2, 16], strides = [1, 1]} : vector<2x256xf32> to vector<2x16xf32>
    %88 = vector.extract_strided_slice %86 {offsets = [0, 0], sizes = [2, 240], strides = [1, 1]} : vector<2x256xf32> to vector<2x240xf32>
    %89 = tpu.concatenate %87, %88 in 1 : vector<2x16xf32>, vector<2x240xf32> -> vector<2x256xf32>
    %c1_23 = arith.constant 1 : index
    %c0_24 = arith.constant 0 : index
    %90 = vector.load %arg7[%c1_23, %c0_24] : memref<9x256xf32, #tpu.memory_space<vmem>>, vector<1x256xf32>
    %91 = vector.broadcast %90 : vector<1x256xf32> to vector<2x256xf32>
    %92 = arith.mulf %89, %91 : vector<2x256xf32>
    %93 = arith.addf %85, %92 : vector<2x256xf32>
    %94 = vector.extract_strided_slice %78 {offsets = [4, 0], sizes = [2, 256], strides = [1, 1]} : vector<18x256xf32> to vector<2x256xf32>
    %95 = vector.extract_strided_slice %94 {offsets = [0, 241], sizes = [2, 15], strides = [1, 1]} : vector<2x256xf32> to vector<2x15xf32>
    %96 = vector.extract_strided_slice %94 {offsets = [0, 0], sizes = [2, 241], strides = [1, 1]} : vector<2x256xf32> to vector<2x241xf32>
    %97 = tpu.concatenate %95, %96 in 1 : vector<2x15xf32>, vector<2x241xf32> -> vector<2x256xf32>
    %c2_25 = arith.constant 2 : index
    %c0_26 = arith.constant 0 : index
    %98 = vector.load %arg7[%c2_25, %c0_26] : memref<9x256xf32, #tpu.memory_space<vmem>>, vector<1x256xf32>
    %99 = vector.broadcast %98 : vector<1x256xf32> to vector<2x256xf32>
    %100 = arith.mulf %97, %99 : vector<2x256xf32>
    %101 = arith.addf %93, %100 : vector<2x256xf32>
    %102 = vector.extract_strided_slice %78 {offsets = [6, 0], sizes = [2, 256], strides = [1, 1]} : vector<18x256xf32> to vector<2x256xf32>
    %103 = vector.extract_strided_slice %102 {offsets = [0, 255], sizes = [2, 1], strides = [1, 1]} : vector<2x256xf32> to vector<2x1xf32>
    %104 = vector.extract_strided_slice %102 {offsets = [0, 0], sizes = [2, 255], strides = [1, 1]} : vector<2x256xf32> to vector<2x255xf32>
    %105 = tpu.concatenate %103, %104 in 1 : vector<2x1xf32>, vector<2x255xf32> -> vector<2x256xf32>
    %c3_27 = arith.constant 3 : index
    %c0_28 = arith.constant 0 : index
    %106 = vector.load %arg7[%c3_27, %c0_28] : memref<9x256xf32, #tpu.memory_space<vmem>>, vector<1x256xf32>
    %107 = vector.broadcast %106 : vector<1x256xf32> to vector<2x256xf32>
    %108 = arith.mulf %105, %107 : vector<2x256xf32>
    %109 = arith.addf %101, %108 : vector<2x256xf32>
    %110 = vector.extract_strided_slice %78 {offsets = [8, 0], sizes = [2, 256], strides = [1, 1]} : vector<18x256xf32> to vector<2x256xf32>
    %111 = arith.addf %109, %110 : vector<2x256xf32>
    %112 = vector.extract_strided_slice %78 {offsets = [10, 0], sizes = [2, 256], strides = [1, 1]} : vector<18x256xf32> to vector<2x256xf32>
    %113 = vector.extract_strided_slice %112 {offsets = [0, 1], sizes = [2, 255], strides = [1, 1]} : vector<2x256xf32> to vector<2x255xf32>
    %114 = vector.extract_strided_slice %112 {offsets = [0, 0], sizes = [2, 1], strides = [1, 1]} : vector<2x256xf32> to vector<2x1xf32>
    %115 = tpu.concatenate %113, %114 in 1 : vector<2x255xf32>, vector<2x1xf32> -> vector<2x256xf32>
    %c5_29 = arith.constant 5 : index
    %c0_30 = arith.constant 0 : index
    %116 = vector.load %arg7[%c5_29, %c0_30] : memref<9x256xf32, #tpu.memory_space<vmem>>, vector<1x256xf32>
    %117 = vector.broadcast %116 : vector<1x256xf32> to vector<2x256xf32>
    %118 = arith.mulf %115, %117 : vector<2x256xf32>
    %119 = arith.addf %111, %118 : vector<2x256xf32>
    %120 = vector.extract_strided_slice %78 {offsets = [12, 0], sizes = [2, 256], strides = [1, 1]} : vector<18x256xf32> to vector<2x256xf32>
    %121 = vector.extract_strided_slice %120 {offsets = [0, 15], sizes = [2, 241], strides = [1, 1]} : vector<2x256xf32> to vector<2x241xf32>
    %122 = vector.extract_strided_slice %120 {offsets = [0, 0], sizes = [2, 15], strides = [1, 1]} : vector<2x256xf32> to vector<2x15xf32>
    %123 = tpu.concatenate %121, %122 in 1 : vector<2x241xf32>, vector<2x15xf32> -> vector<2x256xf32>
    %c6_31 = arith.constant 6 : index
    %c0_32 = arith.constant 0 : index
    %124 = vector.load %arg7[%c6_31, %c0_32] : memref<9x256xf32, #tpu.memory_space<vmem>>, vector<1x256xf32>
    %125 = vector.broadcast %124 : vector<1x256xf32> to vector<2x256xf32>
    %126 = arith.mulf %123, %125 : vector<2x256xf32>
    %127 = arith.addf %119, %126 : vector<2x256xf32>
    %128 = vector.extract_strided_slice %78 {offsets = [14, 0], sizes = [2, 256], strides = [1, 1]} : vector<18x256xf32> to vector<2x256xf32>
    %129 = vector.extract_strided_slice %128 {offsets = [0, 16], sizes = [2, 240], strides = [1, 1]} : vector<2x256xf32> to vector<2x240xf32>
    %130 = vector.extract_strided_slice %128 {offsets = [0, 0], sizes = [2, 16], strides = [1, 1]} : vector<2x256xf32> to vector<2x16xf32>
    %131 = tpu.concatenate %129, %130 in 1 : vector<2x240xf32>, vector<2x16xf32> -> vector<2x256xf32>
    %c7_33 = arith.constant 7 : index
    %c0_34 = arith.constant 0 : index
    %132 = vector.load %arg7[%c7_33, %c0_34] : memref<9x256xf32, #tpu.memory_space<vmem>>, vector<1x256xf32>
    %133 = vector.broadcast %132 : vector<1x256xf32> to vector<2x256xf32>
    %134 = arith.mulf %131, %133 : vector<2x256xf32>
    %135 = arith.addf %127, %134 : vector<2x256xf32>
    %136 = vector.extract_strided_slice %78 {offsets = [16, 0], sizes = [2, 256], strides = [1, 1]} : vector<18x256xf32> to vector<2x256xf32>
    %137 = vector.extract_strided_slice %136 {offsets = [0, 17], sizes = [2, 239], strides = [1, 1]} : vector<2x256xf32> to vector<2x239xf32>
    %138 = vector.extract_strided_slice %136 {offsets = [0, 0], sizes = [2, 17], strides = [1, 1]} : vector<2x256xf32> to vector<2x17xf32>
    %139 = tpu.concatenate %137, %138 in 1 : vector<2x239xf32>, vector<2x17xf32> -> vector<2x256xf32>
    %c8_35 = arith.constant 8 : index
    %c0_36 = arith.constant 0 : index
    %140 = vector.load %arg7[%c8_35, %c0_36] : memref<9x256xf32, #tpu.memory_space<vmem>>, vector<1x256xf32>
    %141 = vector.broadcast %140 : vector<1x256xf32> to vector<2x256xf32>
    %142 = arith.mulf %139, %141 : vector<2x256xf32>
    %143 = arith.addf %135, %142 : vector<2x256xf32>
    %c0_37 = arith.constant 0 : index
    %c0_38 = arith.constant 0 : index
    %144 = vector.load %arg6[%c0_37, %c0_38] : memref<2x1xf32, #tpu.memory_space<vmem>>, vector<2x1xf32>
    %145 = vector.broadcast %144 : vector<2x1xf32> to vector<2x256xf32>
    %146 = arith.addf %143, %145 : vector<2x256xf32>
    %c0_39 = arith.constant 0 : index
    %c0_40 = arith.constant 0 : index
    %c0_41 = arith.constant 0 : index
    %147 = vector.load %arg8[%c0_39, %c0_40, %c0_41] : memref<1x2x256xf32, #tpu.memory_space<vmem>>, vector<1x2x256xf32>
    %148 = vector.shape_cast %147 : vector<1x2x256xf32> to vector<2x256xf32>
    %149 = vector.shape_cast %146 : vector<2x256xf32> to vector<1x2x256xf32>
    tpu.vector_store %arg8[%c0_39, %c0_40, %c0_41], %149 {strides = array<i32>} : memref<1x2x256xf32, #tpu.memory_space<vmem>>, vector<1x2x256xf32>,
    return
  }
  func.func @transform_0(%arg0: i32) -> (i32, i32, i32) {
    %c0_i32 = arith.constant 0 : i32
    %c0_i32_0 = arith.constant 0 : i32
    %c0_i32_1 = arith.constant 0 : i32
    return %arg0, %c0_i32, %c0_i32_0 : i32, i32, i32
  }
  func.func @transform_1(%arg0: i32) -> (i32, i32) {
    %c0_i32 = arith.constant 0 : i32
    %c0_i32_0 = arith.constant 0 : i32
    %c0_i32_1 = arith.constant 0 : i32
    return %c0_i32, %c0_i32_0 : i32, i32
  }
  func.func @transform_2(%arg0: i32) -> (i32, i32) {
    %c0_i32 = arith.constant 0 : i32
    %c0_i32_0 = arith.constant 0 : i32
    %c0_i32_1 = arith.constant 0 : i32
    return %c0_i32, %c0_i32_0 : i32, i32
  }
  func.func @transform_3(%arg0: i32) -> (i32, i32) {
    %c0_i32 = arith.constant 0 : i32
    %c0_i32_0 = arith.constant 0 : i32
    %c0_i32_1 = arith.constant 0 : i32
    return %c0_i32, %c0_i32_0 : i32, i32
  }
  func.func @transform_4(%arg0: i32) -> (i32, i32) {
    %c0_i32 = arith.constant 0 : i32
    %c0_i32_0 = arith.constant 0 : i32
    %c0_i32_1 = arith.constant 0 : i32
    return %c0_i32, %c0_i32_0 : i32, i32
  }
  func.func @transform_5(%arg0: i32) -> (i32, i32) {
    %c0_i32 = arith.constant 0 : i32
    %c0_i32_0 = arith.constant 0 : i32
    %c0_i32_1 = arith.constant 0 : i32
    return %c0_i32, %c0_i32_0 : i32, i32
  }
  func.func @transform_6(%arg0: i32) -> (i32, i32) {
    %c0_i32 = arith.constant 0 : i32
    %c0_i32_0 = arith.constant 0 : i32
    %c0_i32_1 = arith.constant 0 : i32
    return %c0_i32, %c0_i32_0 : i32, i32
  }
  func.func @transform_7(%arg0: i32) -> (i32, i32, i32) {
    %c0_i32 = arith.constant 0 : i32
    %c0_i32_0 = arith.constant 0 : i32
    %c0_i32_1 = arith.constant 0 : i32
    return %arg0, %c0_i32, %c0_i32_0 : i32, i32, i32
  }
}

</mosaic_0001>

<bundles_post_ra>
// kernel: squeeze.3
= control target key start
LH: loop header
LB: loop body
LE: loop exit
PB: predicated region body
PF: predicated region fallthrough
CT: control target
= control target key end

     0   :  { %s139_s0 = inlined_call_operand.vmem [shape: f32[2,256], index: 0, kind: input, shape index: {}]   ;;  %s140_s1 = inlined_call_operand.hbm [shape: f32[2,1,16,16], index: 1, kind: output, shape index: {}]  }
   0x1   :  { %v72_v0 = vld [vmem:[%s139_s0 + $0x2] sm:$0x3]  ;;  %v10_v1 = vld [vmem:[%s139_s0] sm:$0x3] }
   0x2   :  { %9 = vst [vmem:[#allocation2 + $0x8] sm:$0x3] %v72_v0  ;;  %11 = vst [vmem:[#allocation2] sm:$0x3] %v10_v1 }
   0x3   :  { %2 = vsyncpa [#allocation1], 0  ;;  %vm13_vm0 = vcmask 130048   ;;  %s103_s0 = smov 112   ;;  %s104_s10 = smov 80  }
   0x4   :  { %s105_s11 = smov 96   ;;  %s106_s12 = smov 64  }
   0x5   :  { %s107_s13 = smov 48   ;;  %s108_s14 = smov 32  }
   0x6   :  { %s109_s15 = smov 16   ;;  %s110_s16 = smov [#allocation0]  }
   0x7   :  { %s66_s17 = sshll.u32 %s110_s16, 4  ;;  %s67_s17 = int_to_ptr.vmem [resolvable:$true] %s66_s17 }
   0x8   :  { %s81_s18 = scalar_lea.vmem %s67_s17, 512  ;;  %p86_p1 = scmp.lt.s32.totalorder %s67_s17, %s67_s17 }
   0x9   :  { %v20_v2 = vld.sshfl [vmem:[#allocation2] sm:$0xff pattern:$0x99999180]   ;;  %p82_p0 = scmp.ne.s32.totalorder %s67_s17, %s81_s18  ;;  %p87_p2 = scmp.lt.s32.totalorder %s81_s18, %s81_s18 }
   0xa   :  { %v12_v3 = vld [vmem:[#allocation2] sm:$0x3]   ;;  %21 = vrot.lane.b32.xlu0 %v20_v2, %s103_s0  ;;  %33 = vrot.lane.b32.xlu1 %v20_v2, %s104_s10  ;;  %v16_v4 = vld [vmem:[#allocation2 + $0x8] sm:$0x3]  }
   0xb   :  { %14 = vst.msk [vmem:[#allocation0] ss:$16 sm:$0x3] %vm13_vm0, %v12_v3   ;;  %19 = vst.msk [vmem:[#allocation0 + $0x8] ss:$16 sm:$0x3] %vm13_vm0, %v16_v4   ;;  %p88_p3 = por %p87_p2, %p86_p1 }
   0xd   :  { %p89_p4 = pnand %p88_p3, %p82_p0 }
   0xe   :  { %27 = vrot.lane.b32.xlu0 %v20_v2, %s105_s11  ;;  %39 = vrot.lane.b32.xlu1 %v20_v2, %s106_s12 }
  0x12   :  { %45 = vrot.lane.b32.xlu0 %v20_v2, %s107_s13  ;;  %51 = vrot.lane.b32.xlu1 %v20_v2, %s108_s14 }
  0x16   :  { %57 = vrot.lane.b32.xlu0 %v20_v2, %s109_s15 }
  0x7c   :  { %v22_v5 = vpop.permute.xlu0 %21   ;;  %v34_v6 = vpop.permute.xlu1 %33  }
  0x7d   :  { %25 = vst.msk [vmem:[#allocation0 + $0x1] ss:$8 sm:$0xf] %vm13_vm0, %v22_v5   ;;  %37 = vst.msk [vmem:[#allocation0 + $0x3] ss:$8 sm:$0xf] %vm13_vm0, %v34_v6  }
  0x80   :  { %v28_v7 = vpop.permute.xlu0 %27   ;;  %v40_v8 = vpop.permute.xlu1 %39  }
  0x81   :  { %31 = vst.msk [vmem:[#allocation0 + $0x2] ss:$8 sm:$0xf] %vm13_vm0, %v28_v7   ;;  %43 = vst.msk [vmem:[#allocation0 + $0x4] ss:$8 sm:$0xf] %vm13_vm0, %v40_v8  }
  0x84   :  { %v46_v9 = vpop.permute.xlu0 %45   ;;  %v52_v10 = vpop.permute.xlu1 %51  }
  0x85   :  { %49 = vst.msk [vmem:[#allocation0 + $0x5] ss:$8 sm:$0xf] %vm13_vm0, %v46_v9   ;;  %55 = vst.msk [vmem:[#allocation0 + $0x6] ss:$8 sm:$0xf] %vm13_vm0, %v52_v10  }
  0x88   :  { %v58_v11 = vpop.permute.xlu0 %57  }
  0x89   :  { %61 = vst.msk [vmem:[#allocation0 + $0x7] ss:$8 sm:$0xf] %vm13_vm0, %v58_v11  }
  0x8a   :  { %92 = shalt.err (!%p89_p4)
}
  0x8b   :  { %69 = dma.vmem_to_hbm [thread:$0]  %s67_s17, 512, %s140_s1, [#allocation1]  }
  0x8c   :  { %101 = dma.done.wait [#allocation1], 512  }
  0x8d   :  { %102 = vsyncadd [#allocation1], 4294966784 }
  0x8e   :  { %71 = vsyncpa [#allocation1], 1 }

// kernel: predict_block.1
= control target key start
LH: loop header
LB: loop body
LE: loop exit
PB: predicated region body
PF: predicated region fallthrough
CT: control target
= control target key end

     0   :  { %s1855_s24 = smov 0   ;;  %s2620_s0 = inlined_call_operand.vmem [shape: f32[2,64,256], index: 0, kind: input, shape index: {}]   ;;  %s2621_s1 = inlined_call_operand.vmem [shape: f32[288,64], index: 1, kind: input, shape index: {}]   ;;  %s2622_s2 = inlined_call_operand.vmem [shape: f32[32,1], index: 2, kind: input, shape index: {}]   ;;  %s2623_s3 = inlined_call_operand.vmem [shape: f32[32,1], index: 3, kind: input, shape index: {}]   ;;  %s2624_s4 = inlined_call_operand.vmem [shape: f32[18,32], index: 4, kind: input, shape index: {}]   ;;  %s2625_s5 = inlined_call_operand.vmem [shape: f32[2,1], index: 5, kind: input, shape index: {}]   ;;  %s2626_s6 = inlined_call_operand.vmem [shape: f32[9,256], index: 6, kind: input, shape index: {}]   ;;  %s2627_s7 = inlined_call_operand.vmem [shape: f32[2,2,256], index: 7, kind: output, shape index: {}]  }
   0x1 LB: > { %s1701_s25 = sadd.s32 4294967295, %s1803_s24   ;;  %p1705_p0 = scmp.ge.s32.totalorder %s1803_s24, 1  ;;  %s1803_s24 = sphi %s1855_s24, %s17_s24  }
   0x2   : > { %p237_p1 = scmp.lt.s32.totalorder %s1803_s24, 3 }
   0x4   : > { %p238_p2 = pnand %p1705_p0, %p237_p1 }
   0x6   : > { %241 = sbr.rel (%p238_p2) target bundleno = 853 (0x355), region = 48 }
   0xb   : > { %p269_p3 = scmp.lt.s32.totalorder %s1701_s25, 1  ;;  %v2628_v0 = vmov 0.0   ;;  %v1806_v1 = vmov 0   ;;  %v279_v18 = vld [vmem:[%s2621_s1] sm:$0xff]  ;;  %vm331_vm0 = vcmask 523264   ;;  %v1315_v20 = vld [vmem:[%s2622_s2 + $0x18] sm:$0xff] }
   0xc   : > { %504 = vmatprep.mubr.f32.mxu0 %v2628_v0  ;;  %624 = vmatprep.mubr.f32.mxu1 %v2628_v0  ;;  %v299_v19 = vld [vmem:[%s2621_s1 + $0xa0] sm:$0xff]  ;;  %v1347_v21 = vld [vmem:[%s2623_s3 + $0x18] sm:$0xff]  ;;  %v280_v22 = vld [vmem:[%s2621_s1 + $0x8] sm:$0xff]  ;;  %s1807_s22 = smov 127   ;;  %s1808_s23 = smov 17   ;;  %vm1040_vm1 = vcmask 1039360  }
   0xd   : > { %s2680_s25 = smov (!%p269_p3, %s1701_s25), 1  ;;  %1795 = vset.pattern.permute.xlu0 %v1806_v1  ;;  %1796 = vset.pattern.permute.xlu1 %v1806_v1  ;;  %v300_v23 = vld [vmem:[%s2621_s1 + $0xa8] sm:$0xff]  ;;  %v1314_v24 = vld [vmem:[%s2622_s2 + $0x10] sm:$0xff]  ;;  %v302_v27 = vld [vmem:[%s2621_s1 + $0xb8] sm:$0xff]  ;;  %s1810_s27 = smov 113   ;;  %vm749_vm2 = vcmask 138240  }
   0xe   : > { %s1759_s26 = sshll.u32 %s2680_s25, 7  ;;  %1333 = vperm.xlu0 %1795, %v1315_v20   ;;  %1365 = vperm.xlu1 %1796, %v1347_v21   ;;  %v281_v25 = vld [vmem:[%s2621_s1 + $0x10] sm:$0xff]  ;;  %v282_v28 = vld [vmem:[%s2621_s1 + $0x18] sm:$0xff]  ;;  %v283_v29 = vld [vmem:[%s2621_s1 + $0x20] sm:$0xff]  ;;  %s1811_s28 = smov 112   ;;  %vm1114_vm3 = vcmask 924672  }
   0xf   : > { %s1871_s29 = scalar_lea.vmem %s2620_s0, %s1759_s26  ;;  %v301_v26 = vld [vmem:[%s2621_s1 + $0xb0] sm:$0xff]  ;;  %v303_v30 = vld [vmem:[%s2621_s1 + $0xc0] sm:$0xff]  ;;  %v284_v31 = vld [vmem:[%s2621_s1 + $0x28] sm:$0xff]  ;;  %s1809_s26 = smov 16   ;;  %vm814_vm4 = vcmask 130048   ;;  %vm888_vm5 = vcmask 121856  }
  0x10   : > { %v330_v2 = vld [vmem:[%s1871_s29 + $0x78] sm:$0xff]  ;;  %v329_v3 = vld [vmem:[%s1871_s29 + $0x70] sm:$0xff]  ;;  %v328_v4 = vld [vmem:[%s1871_s29 + $0x68] sm:$0xff]  ;;  %s1813_s30 = smov 1   ;;  %s1814_s8 = smov 111   ;;  %vm1188_vm6 = vcmask 916480  }
  0x11   : > { %456 = vmatprep.subr.mxu0 %v330_v2  ;;  %1761 = vmatprep.subr.mxu1 %v330_v2  ;;  %v327_v5 = vld [vmem:[%s1871_s29 + $0x60] sm:$0xff]  ;;  %v326_v6 = vld [vmem:[%s1871_s29 + $0x58] sm:$0xff]  ;;  %v325_v7 = vld [vmem:[%s1871_s29 + $0x50] sm:$0xff]  ;;  %vm962_vm7 = vcmask 7168   ;;  %vm1262_vm8 = vcmask 908288   ;;  %vm1387_vm9 = vcmask 261120  }
  0x12   : > { %457 = vmatpush1.msra.mxu0 %v329_v3  ;;  %1769 = vmatpush1.msra.mxu1 %v329_v3  ;;  %v324_v8 = vld [vmem:[%s1871_s29 + $0x48] sm:$0xff]  ;;  %v323_v9 = vld [vmem:[%s1871_s29 + $0x40] sm:$0xff]  ;;  %v322_v10 = vld [vmem:[%s1871_s29 + $0x38] sm:$0xff] }
  0x13   : > { %458 = vmatprep.subr.mxu0 %v328_v4  ;;  %1762 = vmatprep.subr.mxu1 %v328_v4  ;;  %v321_v11 = vld [vmem:[%s1871_s29 + $0x30] sm:$0xff]  ;;  %v320_v12 = vld [vmem:[%s1871_s29 + $0x28] sm:$0xff]  ;;  %v319_v13 = vld [vmem:[%s1871_s29 + $0x20] sm:$0xff] }
  0x14   : > { %459 = vmatpush1.msra.mxu0 %v327_v5  ;;  %1770 = vmatpush1.msra.mxu1 %v327_v5  ;;  %v318_v14 = vld [vmem:[%s1871_s29 + $0x18] sm:$0xff]  ;;  %v317_v15 = vld [vmem:[%s1871_s29 + $0x10] sm:$0xff]  ;;  %v316_v16 = vld [vmem:[%s1871_s29 + $0x8] sm:$0xff] }
  0x15   : > { %460 = vmatprep.subr.mxu0 %v326_v6  ;;  %1763 = vmatprep.subr.mxu1 %v326_v6  ;;  %v315_v17 = vld [vmem:[%s1871_s29] sm:$0xff]  ;;  %v304_v32 = vld [vmem:[%s2621_s1 + $0xc8] sm:$0xff]  ;;  %v285_v33 = vld [vmem:[%s2621_s1 + $0x30] sm:$0xff]  ;;  %s1812_s29 = smov 15  }
  0x16   : > { %461 = vmatpush1.msra.mxu0 %v325_v7  ;;  %1771 = vmatpush1.msra.mxu1 %v325_v7  ;;  %v305_v34 = vld [vmem:[%s2621_s1 + $0xd0] sm:$0xff]  ;;  %v286_v35 = vld [vmem:[%s2621_s1 + $0x38] sm:$0xff]  ;;  %v307_v37 = vld [vmem:[%s2621_s1 + $0xe0] sm:$0xff] }
  0x17   : > { %462 = vmatprep.subr.mxu0 %v324_v8  ;;  %1764 = vmatprep.subr.mxu1 %v324_v8  ;;  %v306_v36 = vld [vmem:[%s2621_s1 + $0xd8] sm:$0xff]  ;;  %v287_v38 = vld [vmem:[%s2621_s1 + $0x40] sm:$0xff]  ;;  %v308_v39 = vld [vmem:[%s2621_s1 + $0xe8] sm:$0xff] }
  0x18   : > { %463 = vmatpush1.msra.mxu0 %v323_v9  ;;  %1772 = vmatpush1.msra.mxu1 %v323_v9  ;;  %v288_v40 = vld [vmem:[%s2621_s1 + $0x48] sm:$0xff]  ;;  %v309_v41 = vld [vmem:[%s2621_s1 + $0xf0] sm:$0xff]  ;;  %v310_v43 = vld [vmem:[%s2621_s1 + $0xf8] sm:$0xff] }
  0x19   : > { %464 = vmatprep.subr.mxu0 %v322_v10  ;;  %1765 = vmatprep.subr.mxu1 %v322_v10  ;;  %v289_v42 = vld [vmem:[%s2621_s1 + $0x50] sm:$0xff]  ;;  %v290_v44 = vld [vmem:[%s2621_s1 + $0x58] sm:$0xff]  ;;  %v291_v45 = vld [vmem:[%s2621_s1 + $0x60] sm:$0xff] }
  0x1a   : > { %465 = vmatpush1.msra.mxu0 %v321_v11  ;;  %1773 = vmatpush1.msra.mxu1 %v321_v11  ;;  %v311_v46 = vld [vmem:[%s2621_s1 + $0x100] sm:$0xff]  ;;  %v292_v47 = vld [vmem:[%s2621_s1 + $0x68] sm:$0xff]  ;;  %v313_v49 = vld [vmem:[%s2621_s1 + $0x110] sm:$0xff] }
  0x1b   : > { %466 = vmatprep.subr.mxu0 %v320_v12  ;;  %1766 = vmatprep.subr.mxu1 %v320_v12  ;;  %v312_v48 = vld [vmem:[%s2621_s1 + $0x108] sm:$0xff]  ;;  %v293_v50 = vld [vmem:[%s2621_s1 + $0x70] sm:$0xff]  ;;  %v314_v51 = vld [vmem:[%s2621_s1 + $0x118] sm:$0xff] }
  0x1c   : > { %467 = vmatpush1.msra.mxu0 %v319_v13  ;;  %1774 = vmatpush1.msra.mxu1 %v319_v13  ;;  %v294_v52 = vld [vmem:[%s2621_s1 + $0x78] sm:$0xff]  ;;  %v295_v53 = vld [vmem:[%s2621_s1 + $0x80] sm:$0xff]  ;;  %v296_v54 = vld [vmem:[%s2621_s1 + $0x88] sm:$0xff] }
  0x1d   : > { %468 = vmatprep.subr.mxu0 %v318_v14  ;;  %1767 = vmatprep.subr.mxu1 %v318_v14  ;;  %v297_v55 = vld [vmem:[%s2621_s1 + $0x90] sm:$0xff]  ;;  %v298_v56 = vld [vmem:[%s2621_s1 + $0x98] sm:$0xff] }
  0x1e   : > { %469 = vmatpush1.msra.mxu0 %v317_v15  ;;  %1775 = vmatpush1.msra.mxu1 %v317_v15 }
  0x1f   : > { %470 = vmatprep.subr.mxu0 %v316_v16  ;;  %1768 = vmatprep.subr.mxu1 %v316_v16 }
  0x20   : > { %471 = vmatpush1.msra.mxu0 %v315_v17  ;;  %1776 = vmatpush1.msra.mxu1 %v315_v17 }
  0x21   : > { %1710 = vmatmul.mubr.msk.f32.vlgmr.msra.gmra.mxu0 %vm331_vm0, %v279_v18  ;;  %1730 = vmatmul.mubr.msk.f32.vlgmr.msra.gmra.mxu1 %vm331_vm0, %v299_v19 }
  0x22   : > { %510 = vmatprep.mubr.f32.mxu0 %v2628_v0  ;;  %630 = vmatprep.mubr.f32.mxu1 %v2628_v0 }
  0x23   : > { %1328 = vperm.xlu0 %1795, %v1314_v24  }
  0x25   : > { %1711 = vmatmul.mubr.msk.f32.gmra.mxu0 %vm331_vm0, %v280_v22  ;;  %1731 = vmatmul.mubr.msk.f32.gmra.mxu1 %vm331_vm0, %v300_v23 }
  0x26   : > { %516 = vmatprep.mubr.f32.mxu0 %v2628_v0  ;;  %636 = vmatprep.mubr.f32.mxu1 %v2628_v0 }
  0x29   : > { %1712 = vmatmul.mubr.msk.f32.gmra.mxu0 %vm331_vm0, %v281_v25  ;;  %1732 = vmatmul.mubr.msk.f32.gmra.mxu1 %vm331_vm0, %v301_v26 }
  0x2a   : > { %642 = vmatprep.mubr.f32.mxu1 %v2628_v0  ;;  %522 = vmatprep.mubr.f32.mxu0 %v2628_v0 }
  0x2d   : > { %1733 = vmatmul.mubr.msk.f32.gmra.mxu1 %vm331_vm0, %v302_v27  ;;  %1713 = vmatmul.mubr.msk.f32.gmra.mxu0 %vm331_vm0, %v282_v28 }
  0x2e   : > { %528 = vmatprep.mubr.f32.mxu0 %v2628_v0  ;;  %648 = vmatprep.mubr.f32.mxu1 %v2628_v0 }
  0x31   : > { %1714 = vmatmul.mubr.msk.f32.gmra.mxu0 %vm331_vm0, %v283_v29  ;;  %1734 = vmatmul.mubr.msk.f32.gmra.mxu1 %vm331_vm0, %v303_v30 }
  0x32   : > { %534 = vmatprep.mubr.f32.mxu0 %v2628_v0  ;;  %654 = vmatprep.mubr.f32.mxu1 %v2628_v0 }
  0x35   : > { %1715 = vmatmul.mubr.msk.f32.gmra.mxu0 %vm331_vm0, %v284_v31  ;;  %1735 = vmatmul.mubr.msk.f32.gmra.mxu1 %vm331_vm0, %v304_v32 }
  0x36   : > { %540 = vmatprep.mubr.f32.mxu0 %v2628_v0  ;;  %660 = vmatprep.mubr.f32.mxu1 %v2628_v0 }
  0x39   : > { %1716 = vmatmul.mubr.msk.f32.gmra.mxu0 %vm331_vm0, %v285_v33  ;;  %1736 = vmatmul.mubr.msk.f32.gmra.mxu1 %vm331_vm0, %v305_v34 }
  0x3a   : > { %546 = vmatprep.mubr.f32.mxu0 %v2628_v0  ;;  %666 = vmatprep.mubr.f32.mxu1 %v2628_v0 }
  0x3d   : > { %1717 = vmatmul.mubr.msk.f32.gmra.mxu0 %vm331_vm0, %v286_v35  ;;  %1737 = vmatmul.mubr.msk.f32.gmra.mxu1 %vm331_vm0, %v306_v36 }
  0x3e   : > { %672 = vmatprep.mubr.f32.mxu1 %v2628_v0  ;;  %552 = vmatprep.mubr.f32.mxu0 %v2628_v0 }
  0x41   : > { %1738 = vmatmul.mubr.msk.f32.gmra.mxu1 %vm331_vm0, %v307_v37  ;;  %1718 = vmatmul.mubr.msk.f32.gmra.mxu0 %vm331_vm0, %v287_v38 }
  0x42   : > { %678 = vmatprep.mubr.f32.mxu1 %v2628_v0  ;;  %558 = vmatprep.mubr.f32.mxu0 %v2628_v0 }
  0x45   : > { %1739 = vmatmul.mubr.msk.f32.gmra.mxu1 %vm331_vm0, %v308_v39  ;;  %1719 = vmatmul.mubr.msk.f32.gmra.mxu0 %vm331_vm0, %v288_v40 }
  0x46   : > { %684 = vmatprep.mubr.f32.mxu1 %v2628_v0  ;;  %564 = vmatprep.mubr.f32.mxu0 %v2628_v0 }
  0x49   : > { %1740 = vmatmul.mubr.msk.f32.gmra.mxu1 %vm331_vm0, %v309_v41  ;;  %1720 = vmatmul.mubr.msk.f32.gmra.mxu0 %vm331_vm0, %v289_v42 }
  0x4a   : > { %690 = vmatprep.mubr.f32.mxu1 %v2628_v0  ;;  %570 = vmatprep.mubr.f32.mxu0 %v2628_v0 }
  0x4d   : > { %1741 = vmatmul.mubr.msk.f32.gmra.mxu1 %vm331_vm0, %v310_v43  ;;  %1721 = vmatmul.mubr.msk.f32.gmra.mxu0 %vm331_vm0, %v290_v44 }
  0x4e   : > { %576 = vmatprep.mubr.f32.mxu0 %v2628_v0  ;;  %696 = vmatprep.mubr.f32.mxu1 %v2628_v0 }
  0x51   : > { %1722 = vmatmul.mubr.msk.f32.gmra.mxu0 %vm331_vm0, %v291_v45  ;;  %1742 = vmatmul.mubr.msk.f32.gmra.mxu1 %vm331_vm0, %v311_v46 }
  0x52   : > { %582 = vmatprep.mubr.f32.mxu0 %v2628_v0  ;;  %702 = vmatprep.mubr.f32.mxu1 %v2628_v0 }
  0x55   : > { %1723 = vmatmul.mubr.msk.f32.gmra.mxu0 %vm331_vm0, %v292_v47  ;;  %1743 = vmatmul.mubr.msk.f32.gmra.mxu1 %vm331_vm0, %v312_v48 }
  0x56   : > { %708 = vmatprep.mubr.f32.mxu1 %v2628_v0  ;;  %588 = vmatprep.mubr.f32.mxu0 %v2628_v0 }
  0x59   : > { %1744 = vmatmul.mubr.msk.f32.gmra.mxu1 %vm331_vm0, %v313_v49  ;;  %1724 = vmatmul.mubr.msk.f32.gmra.mxu0 %vm331_vm0, %v293_v50 }
  0x5a   : > { %714 = vmatprep.mubr.f32.mxu1 %v2628_v0  ;;  %594 = vmatprep.mubr.f32.mxu0 %v2628_v0 }
  0x5d   : > { %1745 = vmatmul.mubr.msk.f32.gmra.mxu1 %vm331_vm0, %v314_v51  ;;  %1725 = vmatmul.mubr.msk.f32.gmra.mxu0 %vm331_vm0, %v294_v52 }
  0x5e   : > { %600 = vmatprep.mubr.f32.mxu0 %v2628_v0  ;;  %1461 = vmatprep.mubr.f32.mxu1 %v2628_v0 }
  0x61   : > { %1726 = vmatmul.mubr.msk.f32.gmra.mxu0 %vm331_vm0, %v295_v53 }
  0x62   : > { %606 = vmatprep.mubr.f32.mxu0 %v2628_v0 }
  0x65   : > { %1727 = vmatmul.mubr.msk.f32.gmra.mxu0 %vm331_vm0, %v296_v54 }
  0x66   : > { %612 = vmatprep.mubr.f32.mxu0 %v2628_v0 }
  0x69   : > { %1728 = vmatmul.mubr.msk.f32.gmra.mxu0 %vm331_vm0, %v297_v55 }
  0x6a   : > { %618 = vmatprep.mubr.f32.mxu0 %v2628_v0 }
  0x6d   : > { %1729 = vmatmul.mubr.msk.f32.gmra.mxu0 %vm331_vm0, %v298_v56 }
  0x89   : > { %v2131_v54 = vpop.permute.xlu0 %1333 }
  0x8a   : > { %2646 = vst [vmem:[#allocation2_spill] sm:$0xff] %v2131_v54 }
  0xe1   : > { %v506_v57 = vpop.f32.mrf.mxu0  ;;  %v626_v58 = vpop.f32.mrf.mxu1 }
  0xe2   : > { %1024 = vrot.lane.b32.xlu0 %v626_v58, %s1807_s22  ;;  %741 = vrot.lane.b32.xlu1 %v506_v57, %s1808_s23  ;;  %v2137_v57 = vpop.permute.xlu1 %1365  ;;  %v2139_v58 = vpop.permute.xlu0 %1328 }
  0xe3   : > { %v508_v59 = vpop.f32.mrf.mxu0  ;;  %v628_v60 = vpop.f32.mrf.mxu1  ;;  %2647 = vst [vmem:[#allocation3_spill] sm:$0xff] %v2137_v57  ;;  %2648 = vst [vmem:[#allocation4_spill] sm:$0xff] %v2139_v58 }
  0xe5   : > { %v632_v61 = vpop.f32.mrf.mxu1  ;;  %v512_v62 = vpop.f32.mrf.mxu0 }
  0xe6   : > { %1026 = vrot.lane.b32.xlu1 %v628_v60, %s1807_s22  ;;  %725 = vrot.lane.b32.xlu0 %v508_v59, %s1808_s23 }
  0xe7   : > { %v634_v63 = vpop.f32.mrf.mxu1  ;;  %v514_v1 = vpop.f32.mrf.mxu0 }
  0xe9   : > { %v638_v2 = vpop.f32.mrf.mxu1  ;;  %v518_v3 = vpop.f32.mrf.mxu0 }
  0xea   : > { %1028 = vrot.lane.b32.xlu0 %v632_v61, %s1807_s22  ;;  %743 = vrot.lane.b32.xlu1 %v512_v62, %s1808_s23 }
  0xeb   : > { %v640_v4 = vpop.f32.mrf.mxu1  ;;  %v520_v5 = vpop.f32.mrf.mxu0 }
  0xed   : > { %v644_v6 = vpop.f32.mrf.mxu1  ;;  %v524_v7 = vpop.f32.mrf.mxu0 }
  0xee   : > { %1030 = vrot.lane.b32.xlu1 %v634_v63, %s1807_s22  ;;  %727 = vrot.lane.b32.xlu0 %v514_v1, %s1808_s23  ;;  %v1313_v1 = vld [vmem:[%s2622_s2 + $0x8] sm:$0xff] }
  0xef   : > { %v646_v8 = vpop.f32.mrf.mxu1  ;;  %v526_v9 = vpop.f32.mrf.mxu0 }
  0xf1   : > { %v530_v10 = vpop.f32.mrf.mxu0  ;;  %v650_v11 = vpop.f32.mrf.mxu1 }
  0xf2   : > { %1032 = vrot.lane.b32.xlu0 %v638_v2, %s1807_s22  ;;  %745 = vrot.lane.b32.xlu1 %v518_v3, %s1808_s23 }
  0xf3   : > { %v532_v12 = vpop.f32.mrf.mxu0  ;;  %v652_v13 = vpop.f32.mrf.mxu1 }
  0xf5   : > { %v536_v14 = vpop.f32.mrf.mxu0  ;;  %v656_v15 = vpop.f32.mrf.mxu1 }
  0xf6   : > { %1034 = vrot.lane.b32.xlu1 %v640_v4, %s1807_s22  ;;  %729 = vrot.lane.b32.xlu0 %v520_v5, %s1808_s23 }
  0xf7   : > { %v538_v16 = vpop.f32.mrf.mxu0  ;;  %v658_v17 = vpop.f32.mrf.mxu1 }
  0xf9   : > { %v542_v18 = vpop.f32.mrf.mxu0  ;;  %v662_v19 = vpop.f32.mrf.mxu1 }
  0xfa   : > { %1038 = vrot.lane.b32.xlu1 %v646_v8, %s1807_s22  ;;  %747 = vrot.lane.b32.xlu0 %v524_v7, %s1808_s23 }
  0xfb   : > { %v544_v20 = vpop.f32.mrf.mxu0  ;;  %v664_v21 = vpop.f32.mrf.mxu1 }
  0xfd   : > { %v548_v22 = vpop.f32.mrf.mxu0  ;;  %v668_v23 = vpop.f32.mrf.mxu1 }
  0xfe   : > { %1036 = vrot.lane.b32.xlu0 %v644_v6, %s1807_s22  ;;  %806 = vrot.lane.b32.xlu1 %v530_v10, %s1809_s26  ;;  %v1346_v6 = vld [vmem:[%s2623_s3 + $0x10] sm:$0xff] }
  0xff   : > { %v550_v24 = vpop.f32.mrf.mxu0  ;;  %v670_v25 = vpop.f32.mrf.mxu1 }
 0x101   : > { %v554_v26 = vpop.f32.mrf.mxu0  ;;  %v674_v27 = vpop.f32.mrf.mxu1 }
 0x102   : > { %731 = vrot.lane.b32.xlu0 %v526_v9, %s1808_s23  ;;  %1098 = vrot.lane.b32.xlu1 %v650_v11, %s1810_s27  ;;  %v1312_v11 = vld [vmem:[%s2622_s2] sm:$0xff] }
 0x103   : > { %v556_v28 = vpop.f32.mrf.mxu0  ;;  %v676_v29 = vpop.f32.mrf.mxu1 }
 0x105   : > { %v560_v30 = vpop.f32.mrf.mxu0  ;;  %v680_v31 = vpop.f32.mrf.mxu1 }
 0x106   : > { %1100 = vrot.lane.b32.xlu1 %v652_v13, %s1810_s27  ;;  %790 = vrot.lane.b32.xlu0 %v532_v12, %s1809_s26 }
 0x107   : > { %v562_v32 = vpop.f32.mrf.mxu0  ;;  %v682_v33 = vpop.f32.mrf.mxu1 }
 0x109   : > { %v566_v34 = vpop.f32.mrf.mxu0  ;;  %v686_v35 = vpop.f32.mrf.mxu1 }
 0x10a   : > { %1102 = vrot.lane.b32.xlu0 %v656_v15, %s1810_s27  ;;  %808 = vrot.lane.b32.xlu1 %v536_v14, %s1809_s26 }
 0x10b   : > { %v568_v36 = vpop.f32.mrf.mxu0  ;;  %v688_v37 = vpop.f32.mrf.mxu1 }
 0x10d   : > { %v572_v38 = vpop.f32.mrf.mxu0  ;;  %v692_v39 = vpop.f32.mrf.mxu1 }
 0x10e   : > { %1104 = vrot.lane.b32.xlu1 %v658_v17, %s1810_s27  ;;  %792 = vrot.lane.b32.xlu0 %v538_v16, %s1809_s26 }
 0x10f   : > { %v574_v40 = vpop.f32.mrf.mxu0  ;;  %v694_v41 = vpop.f32.mrf.mxu1 }
 0x111   : > { %v578_v42 = vpop.f32.mrf.mxu0  ;;  %v698_v43 = vpop.f32.mrf.mxu1 }
 0x112   : > { %1106 = vrot.lane.b32.xlu0 %v662_v19, %s1810_s27  ;;  %810 = vrot.lane.b32.xlu1 %v542_v18, %s1809_s26  ;;  %v1344_v19 = vld [vmem:[%s2623_s3] sm:$0xff] }
 0x113   : > { %v580_v44 = vpop.f32.mrf.mxu0  ;;  %v2121_v45 = vpop.f32.mrf.mxu1 }
 0x115   : > { %v584_v46 = vpop.f32.mrf.mxu0  ;;  %v704_v47 = vpop.f32.mrf.mxu1 }
 0x116   : > { %1108 = vrot.lane.b32.xlu1 %v664_v21, %s1810_s27  ;;  %794 = vrot.lane.b32.xlu0 %v544_v20, %s1809_s26  ;;  %v1345_v20 = vld [vmem:[%s2623_s3 + $0x8] sm:$0xff]  ;;  %v768_v21 = vlaneseq }
 0x117   : > { %v586_v48 = vpop.f32.mrf.mxu0  ;;  %v706_v49 = vpop.f32.mrf.mxu1 }
 0x119   : > { %v710_v50 = vpop.f32.mrf.mxu1  ;;  %v590_v51 = vpop.f32.mrf.mxu0 }
 0x11a   : > { %1110 = vrot.lane.b32.xlu0 %v668_v23, %s1810_s27  ;;  %812 = vrot.lane.b32.xlu1 %v548_v22, %s1809_s26 }
 0x11b   : > { %v592_v52 = vpop.f32.mrf.mxu0  ;;  %v712_v53 = vpop.f32.mrf.mxu1 }
 0x11d   : > { %v716_v55 = vpop.f32.mrf.mxu1  ;;  %v596_v56 = vpop.f32.mrf.mxu0 }
 0x11e   : > { %1172 = vrot.lane.b32.xlu0 %v674_v27, %s1811_s28  ;;  %796 = vrot.lane.b32.xlu1 %v550_v24, %s1809_s26 }
 0x11f   : > { %v598_v59 = vpop.f32.mrf.mxu0  ;;  %v718_v12 = vpop.f32.mrf.mxu1 }
 0x122   : > { %1112 = vrot.lane.b32.xlu1 %v670_v25, %s1810_s27  ;;  %864 = vrot.lane.b32.xlu0 %v556_v28, %s1812_s29 }
 0x126   : > { %880 = vrot.lane.b32.xlu1 %v554_v26, %s1812_s29  ;;  %1176 = vrot.lane.b32.xlu0 %v680_v31, %s1811_s28 }
 0x12a   : > { %1174 = vrot.lane.b32.xlu1 %v676_v29, %s1811_s28  ;;  %866 = vrot.lane.b32.xlu0 %v562_v32, %s1812_s29 }
 0x12e   : > { %882 = vrot.lane.b32.xlu1 %v560_v30, %s1812_s29  ;;  %1180 = vrot.lane.b32.xlu0 %v686_v35, %s1811_s28  ;;  %v769_v30 = vshrl.u32 %v768_v21, 7 }
 0x132   : > { %1178 = vrot.lane.b32.xlu1 %v682_v33, %s1811_s28  ;;  %868 = vrot.lane.b32.xlu0 %v568_v36, %s1812_s29  ;;  %v2189_v33 = vsub.s32 0, %v769_v30 }
 0x134   : > { %2649 = vst [vmem:[#allocation5_spill] sm:$0xff] %v2189_v33 }
 0x136   : > { %884 = vrot.lane.b32.xlu1 %v566_v34, %s1812_s29  ;;  %1184 = vrot.lane.b32.xlu0 %v692_v39, %s1811_s28  ;;  %v2191_v34 = vsub.s32 1, %v769_v30 }
 0x138   : > { %2650 = vst [vmem:[#allocation6_spill] sm:$0xff] %v2191_v34 }
 0x13a   : > { %1182 = vrot.lane.b32.xlu1 %v688_v37, %s1811_s28  ;;  %870 = vrot.lane.b32.xlu0 %v574_v40, %s1812_s29  ;;  %v766_v37 = vld [vmem:[%s2626_s6] ss:$8 sm:$0x3] }
 0x13e   : > { %886 = vrot.lane.b32.xlu1 %v572_v38, %s1812_s29  ;;  %938 = vrot.lane.b32.xlu0 %v580_v44, %s1813_s30  ;;  %v1746_v38 = vld [vmem:[%s2626_s6 + $0x1] ss:$8 sm:$0x3] }
 0x142   : > { %1186 = vrot.lane.b32.xlu1 %v694_v41, %s1811_s28  ;;  %940 = vrot.lane.b32.xlu0 %v586_v48, %s1813_s30  ;;  %v2206_v41 = vrot.slane %v766_v37, %v2189_v33 }
 0x144   : > { %2651 = vst [vmem:[#allocation7_spill] sm:$0xff] %v2206_v41 }
 0x146   : > { %954 = vrot.lane.b32.xlu1 %v578_v42, %s1813_s30  ;;  %1254 = vrot.lane.b32.xlu0 %v710_v50, %s1814_s8  ;;  %v2209_v42 = vrot.slane %v766_v37, %v2191_v34 }
 0x14a   : > { %956 = vrot.lane.b32.xlu1 %v584_v46, %s1813_s30  ;;  %942 = vrot.lane.b32.xlu0 %v592_v52, %s1813_s30  ;;  %v2221_v46 = vrot.slane %v1746_v38, %v2191_v34 }
 0x14e   : > { %958 = vrot.lane.b32.xlu1 %v590_v51, %s1813_s30  ;;  %1258 = vrot.lane.b32.xlu0 %v716_v55, %s1814_s8 }
 0x152   : > { %1256 = vrot.lane.b32.xlu1 %v712_v53, %s1814_s8  ;;  %944 = vrot.lane.b32.xlu0 %v598_v59, %s1813_s30 }
 0x154   : > { %v1025_v60 = vpop.permute.xlu0 %1024  ;;  %v742_v61 = vpop.permute.xlu1 %741 }
 0x156   : > { %960 = vrot.lane.b32.xlu1 %v596_v56, %s1813_s30  ;;  %1250 = vrot.lane.b32.xlu0 %v704_v47, %s1814_s8 }
 0x158   : > { %v1027_v62 = vpop.permute.xlu1 %1026  ;;  %v726_v63 = vpop.permute.xlu0 %725 }
 0x159   : > { %v2149_v2 = vsel %vm1040_vm1, %v1025_v60, %v1027_v62  ;;  %v2152_v3 = vsel %vm1040_vm1, %v1027_v62, %v1025_v60  ;;  %v750_v4 = vsel %vm749_vm2, %v742_v61, %v726_v63  ;;  %v762_v5 = vsel %vm749_vm2, %v726_v63, %v742_v61 }
 0x15a   : > { %1252 = vrot.lane.b32.xlu1 %v706_v49, %s1814_s8  ;;  %1323 = vperm.xlu0 %1795, %v1313_v1   ;;  %v778_v53 = vmul.f32 %v2206_v41, %v762_v5  ;;  %v779_v55 = vmul.f32 %v2209_v42, %v750_v4 }
 0x15c   : > { %v1029_v7 = vpop.permute.xlu0 %1028  ;;  %v744_v8 = vpop.permute.xlu1 %743 }
 0x15e   : > { %1360 = vperm.xlu1 %1796, %v1346_v6   ;;  %1246 = vrot.lane.b32.xlu0 %v698_v43, %s1814_s8 }
 0x160   : > { %v1031_v9 = vpop.permute.xlu1 %1030  ;;  %v728_v10 = vpop.permute.xlu0 %727 }
 0x161   : > { %v2165_v13 = vsel %vm1040_vm1, %v1029_v7, %v1031_v9  ;;  %v2168_v14 = vsel %vm1040_vm1, %v1031_v9, %v1029_v7  ;;  %v751_v15 = vsel %vm749_vm2, %v744_v8, %v728_v10  ;;  %v763_v16 = vsel %vm749_vm2, %v728_v10, %v744_v8 }
 0x162   : > { %1260 = vrot.lane.b32.xlu1 %v718_v12, %s1814_s8  ;;  %1318 = vperm.xlu0 %1795, %v1312_v11   ;;  %v780_v9 = vmul.f32 %v2206_v41, %v763_v16  ;;  %v781_v10 = vmul.f32 %v2209_v42, %v751_v15 }
 0x164   : > { %v1033_v17 = vpop.permute.xlu0 %1032  ;;  %v746_v18 = vpop.permute.xlu1 %745 }
 0x166   : > { %1248 = vrot.lane.b32.xlu1 %v2121_v45, %s1814_s8  ;;  %1350 = vperm.xlu0 %1795, %v1344_v19   ;;  %v2218_v45 = vrot.slane %v1746_v38, %v2189_v33 }
 0x168   : > { %v1035_v22 = vpop.permute.xlu1 %1034  ;;  %v730_v23 = vpop.permute.xlu0 %729  ;;  %2652 = vst [vmem:[#allocation8_spill] sm:$0xff] %v2218_v45 }
 0x169   : > { %v2182_v24 = vsel %vm1040_vm1, %v1033_v17, %v1035_v22  ;;  %v2185_v25 = vsel %vm1040_vm1, %v1035_v22, %v1033_v17  ;;  %v752_v26 = vsel %vm749_vm2, %v746_v18, %v730_v23  ;;  %v764_v27 = vsel %vm749_vm2, %v730_v23, %v746_v18 }
 0x16a   : > { %1355 = vperm.xlu1 %1796, %v1345_v20   ;;  %v783_v30 = vmul.f32 %v2209_v42, %v752_v26 }
 0x16c   : > { %v1039_v28 = vpop.permute.xlu1 %1038  ;;  %v748_v29 = vpop.permute.xlu0 %747 }
 0x170   : > { %v1037_v31 = vpop.permute.xlu0 %1036  ;;  %v807_v32 = vpop.permute.xlu1 %806 }
 0x171   : > { %v2194_v35 = vsel %vm1040_vm1, %v1037_v31, %v1039_v28  ;;  %v2197_v36 = vsel %vm1040_vm1, %v1039_v28, %v1037_v31 }
 0x174   : > { %v732_v39 = vpop.permute.xlu0 %731  ;;  %v1099_v40 = vpop.permute.xlu1 %1098 }
 0x175   : > { %v2212_v43 = vsel %vm749_vm2, %v748_v29, %v732_v39  ;;  %v2215_v44 = vsel %vm749_vm2, %v732_v39, %v748_v29  ;;  %v782_v29 = vmul.f32 %v2206_v41, %v764_v27 }
 0x178   : > { %v1101_v47 = vpop.permute.xlu1 %1100  ;;  %v791_v48 = vpop.permute.xlu0 %790 }
 0x179   : > { %v2224_v49 = vsel %vm1114_vm3, %v1099_v40, %v1101_v47  ;;  %v2227_v50 = vsel %vm1114_vm3, %v1101_v47, %v1099_v40  ;;  %v815_v51 = vsel %vm814_vm4, %v807_v32, %v791_v48  ;;  %v827_v52 = vsel %vm814_vm4, %v791_v48, %v807_v32 }
 0x17a   : > { %v844_v56 = vmul.f32 %v2218_v45, %v827_v52  ;;  %v845_v59 = vmul.f32 %v2221_v46, %v815_v51 }
 0x17c   : > { %v2235_v60 = vadd.f32 %v844_v56, %v778_v53  ;;  %v2237_v61 = vadd.f32 %v845_v59, %v779_v55  ;;  %v1103_v62 = vpop.permute.xlu0 %1102  ;;  %v809_v63 = vpop.permute.xlu1 %808 }
 0x180   : > { %v1105_v1 = vpop.permute.xlu1 %1104  ;;  %v793_v6 = vpop.permute.xlu0 %792 }
 0x181   : > { %v2240_v7 = vsel %vm1114_vm3, %v1103_v62, %v1105_v1  ;;  %v2243_v8 = vsel %vm1114_vm3, %v1105_v1, %v1103_v62  ;;  %v816_v4 = vsel %vm814_vm4, %v809_v63, %v793_v6  ;;  %v828_v5 = vsel %vm814_vm4, %v793_v6, %v809_v63 }
 0x182   : > { %v846_v11 = vmul.f32 %v2218_v45, %v828_v5  ;;  %v847_v12 = vmul.f32 %v2221_v46, %v816_v4 }
 0x184   : > { %v2251_v17 = vadd.f32 %v846_v11, %v780_v9  ;;  %v2253_v18 = vadd.f32 %v847_v12, %v781_v10  ;;  %v1107_v19 = vpop.permute.xlu0 %1106  ;;  %v811_v20 = vpop.permute.xlu1 %810  ;;  %v1749_v9 = vld [vmem:[%s2626_s6 + $0x5] ss:$8 sm:$0x3]  ;;  %v1747_v10 = vld [vmem:[%s2626_s6 + $0x2] ss:$8 sm:$0x3] }
 0x185   : > { %v2303_v11 = vpop.f32.mrf.mxu0  ;;  %v1750_v12 = vld [vmem:[%s2626_s6 + $0x6] ss:$8 sm:$0x3] }
 0x186   : > { %v2333_v0 = vrot.slane %v1750_v12, %v2191_v34 }
 0x187   : > { %v604_v54 = vpop.f32.mrf.mxu0 }
 0x188   : > { %v1109_v21 = vpop.permute.xlu1 %1108  ;;  %v795_v22 = vpop.permute.xlu0 %794 }
 0x189   : > { %v2256_v23 = vsel %vm1114_vm3, %v1107_v19, %v1109_v21  ;;  %v2259_v28 = vsel %vm1114_vm3, %v1109_v21, %v1107_v19  ;;  %v817_v15 = vsel %vm814_vm4, %v811_v20, %v795_v22  ;;  %v829_v16 = vsel %vm814_vm4, %v795_v22, %v811_v20 }
 0x18a   : > { %v848_v31 = vmul.f32 %v2218_v45, %v829_v16  ;;  %v849_v32 = vmul.f32 %v2221_v46, %v817_v15  ;;  %v2311_v21 = vrot.slane %v1749_v9, %v2189_v33  ;;  %v2314_v22 = vrot.slane %v1747_v10, %v2189_v33  ;;  %v1751_v15 = vld [vmem:[%s2626_s6 + $0x7] ss:$8 sm:$0x3]  ;;  %v1748_v16 = vld [vmem:[%s2626_s6 + $0x3] ss:$8 sm:$0x3] }
 0x18b   : > { %v2337_v58 = vrot.slane %v1751_v15, %v2189_v33 }
 0x18c   : > { %v2267_v37 = vadd.f32 %v848_v31, %v782_v29  ;;  %v2269_v38 = vadd.f32 %v849_v32, %v783_v30  ;;  %v2271_v39 = vpop.permute.xlu0 %1110  ;;  %v2273_v40 = vpop.permute.xlu1 %812  ;;  %v2323_v29 = vrot.slane %v1749_v9, %v2191_v34  ;;  %v2326_v30 = vrot.slane %v1747_v10, %v2191_v34 }
 0x18d   : > { %2653 = vst [vmem:[#allocation9_spill] sm:$0xff] %v2271_v39  ;;  %v2330_v32 = vrot.slane %v1750_v12, %v2189_v33  ;;  %v2340_v9 = vrot.slane %v1751_v15, %v2191_v34  ;;  %v1074_v12 = vmul.f32 %v2311_v21, %v2149_v2 }
 0x18e   : > { %v1075_v15 = vmul.f32 %v2323_v29, %v2152_v3  ;;  %v2364_v2 = vmul.f32 %v2323_v29, %v2168_v14 }
 0x18f   : > { %v1148_v3 = vmul.f32 %v2330_v32, %v2224_v49 }
 0x190   : > { %v2275_v47 = vpop.permute.xlu0 %1172  ;;  %v2277_v48 = vpop.permute.xlu1 %796 }
 0x191   : > { %v830_v14 = vsel %vm814_vm4, %v2277_v48, %v2273_v40 }
 0x194   : > { %v2279_v51 = vpop.permute.xlu1 %1112  ;;  %v865_v27 = vpop.permute.xlu0 %864 }
 0x195   : > { %2654 = vst [vmem:[#allocation10_spill] sm:$0xff] %v2279_v51 }
 0x198   : > { %v881_v26 = vpop.permute.xlu1 %880  ;;  %v2281_v52 = vpop.permute.xlu0 %1176 }
 0x199   : > { %2655 = vst [vmem:[#allocation11_spill] sm:$0xff] %v2281_v52  ;;  %v901_v31 = vsel %vm888_vm5, %v865_v27, %v881_v26  ;;  %v889_v57 = vsel %vm888_vm5, %v881_v26, %v865_v27  ;;  %v2345_v52 = vrot.slane %v1748_v16, %v2189_v33 }
 0x19a   : > { %v918_v27 = vmul.f32 %v2314_v22, %v901_v31  ;;  %v919_v33 = vmul.f32 %v2326_v30, %v889_v57  ;;  %v2368_v31 = vmul.f32 %v2311_v21, %v2182_v24  ;;  %v1149_v57 = vmul.f32 %v2333_v0, %v2227_v50 }
 0x19c   : > { %v2283_v53 = vpop.permute.xlu1 %1174  ;;  %v867_v55 = vpop.permute.xlu0 %866  ;;  %v926_v50 = vadd.f32 %v918_v27, %v2235_v60 }
 0x19d   : > { %v1205_v60 = vsel %vm1188_vm6, %v2283_v53, %v2275_v47 }
 0x1a0   : > { %v883_v56 = vpop.permute.xlu1 %882  ;;  %v2285_v59 = vpop.permute.xlu0 %1180 }
 0x1a1   : > { %2656 = vst [vmem:[#allocation12_spill] sm:$0xff] %v2285_v59  ;;  %v902_v26 = vsel %vm888_vm5, %v867_v55, %v883_v56 }
 0x1a2   : > { %v920_v24 = vmul.f32 %v2314_v22, %v902_v26  ;;  %v927_v26 = vadd.f32 %v919_v33, %v2237_v61 }
 0x1a4   : > { %v2287_v62 = vpop.permute.xlu1 %1178  ;;  %v2289_v63 = vpop.permute.xlu0 %868 }
 0x1a5   : > { %2657 = vst [vmem:[#allocation13_spill] sm:$0xff] %v2287_v62  ;;  %v2352_v62 = vrot.slane %v1748_v16, %v2191_v34  ;;  %v2372_v16 = vmul.f32 %v2206_v41, %v2215_v44 }
 0x1a8   : > { %v885_v1 = vpop.permute.xlu1 %884  ;;  %v2291_v6 = vpop.permute.xlu0 %1184 }
 0x1a9   : > { %2658 = vst [vmem:[#allocation14_spill] sm:$0xff] %v2291_v6 }
 0x1ac   : > { %v2293_v4 = vpop.permute.xlu1 %1182  ;;  %v2295_v5 = vpop.permute.xlu0 %870 }
 0x1ad   : > { %2659 = vst [vmem:[#allocation15_spill] sm:$0xff] %v2293_v4  ;;  %v890_v4 = vsel %vm888_vm5, %v883_v56, %v867_v55  ;;  %v2380_v55 = vmul.f32 %v2330_v32, %v2240_v7  ;;  %v903_v7 = vsel %vm888_vm5, %v2289_v63, %v885_v1 }
 0x1ae   : > { %v921_v41 = vmul.f32 %v2326_v30, %v890_v4  ;;  %v850_v4 = vmul.f32 %v2218_v45, %v830_v14 }
 0x1b0   : > { %v2308_v19 = vpop.permute.xlu1 %886  ;;  %v939_v20 = vpop.permute.xlu0 %938  ;;  %v929_v51 = vadd.f32 %v921_v41, %v2253_v18 }
 0x1b4   : > { %v2342_v10 = vpop.permute.xlu1 %1186  ;;  %v941_v6 = vpop.permute.xlu0 %940 }
 0x1b5   : > { %2660 = vst [vmem:[#allocation16_spill] sm:$0xff] %v2342_v10  ;;  %v2358_v10 = vmul.f32 %v2311_v21, %v2165_v13  ;;  %v608_v13 = vpop.f32.mrf.mxu0 }
 0x1b7   : > { %v610_v27 = vpop.f32.mrf.mxu0 }
 0x1b8   : > { %v955_v56 = vpop.permute.xlu1 %954  ;;  %v2386_v44 = vpop.permute.xlu0 %1254 }
 0x1b9   : > { %2661 = vst [vmem:[#allocation17_spill] sm:$0xff] %v2386_v44  ;;  %v963_v49 = vsel %vm962_vm7, %v955_v56, %v939_v20  ;;  %v975_v34 = vsel %vm962_vm7, %v939_v20, %v955_v56  ;;  %v818_v44 = vsel %vm814_vm4, %v2273_v40, %v2277_v48  ;;  %v1189_v20 = vsel %vm1188_vm6, %v2275_v47, %v2283_v53  ;;  %v614_v18 = vpop.f32.mrf.mxu0 }
 0x1ba   : > { %v992_v59 = vmul.f32 %v2345_v52, %v975_v34  ;;  %v993_v39 = vmul.f32 %v2352_v62, %v963_v49  ;;  %v891_v34 = vsel %vm888_vm5, %v885_v1, %v2289_v63  ;;  %v928_v40 = vadd.f32 %v920_v24, %v2251_v17 }
 0x1bb   : > { %v922_v48 = vmul.f32 %v2314_v22, %v903_v7  ;;  %v851_v1 = vmul.f32 %v2221_v46, %v818_v44  ;;  %v1223_v17 = vmul.f32 %v2340_v9, %v1205_v60  ;;  %v923_v24 = vmul.f32 %v2326_v30, %v891_v34 }
 0x1bc   : > { %v1000_v56 = vadd.f32 %v992_v59, %v926_v50  ;;  %v957_v33 = vpop.permute.xlu1 %956  ;;  %v943_v61 = vpop.permute.xlu0 %942  ;;  %v1001_v49 = vadd.f32 %v993_v39, %v927_v26  ;;  %v1222_v39 = vmul.f32 %v2337_v58, %v1189_v20 }
 0x1bd   : > { %v964_v14 = vsel %vm962_vm7, %v957_v33, %v941_v6  ;;  %v976_v45 = vsel %vm962_vm7, %v941_v6, %v957_v33  ;;  %v930_v44 = vadd.f32 %v922_v48, %v2267_v37  ;;  %v1151_v48 = vmul.f32 %v2333_v0, %v2243_v8 }
 0x1be   : > { %v1008_v47 = vadd.f32 %v1000_v56, %v2303_v11  ;;  %v994_v53 = vmul.f32 %v2345_v52, %v976_v45  ;;  %v995_v63 = vmul.f32 %v2352_v62, %v964_v14  ;;  %v1009_v59 = vadd.f32 %v1001_v49, %v604_v54 }
 0x1bf   : > { %v904_v45 = vsel %vm888_vm5, %v2295_v5, %v2308_v19  ;;  %v931_v49 = vadd.f32 %v923_v24, %v2269_v38  ;;  %v785_v38 = vmul.f32 %v2209_v42, %v2212_v43  ;;  %v1153_v43 = vmul.f32 %v2333_v0, %v2259_v28 }
 0x1c0   : > { %v1082_v50 = vadd.f32 %v1074_v12, %v1008_v47  ;;  %v1083_v7 = vadd.f32 %v1075_v15, %v1009_v59  ;;  %v1002_v6 = vadd.f32 %v994_v53, %v928_v40  ;;  %v959_v26 = vpop.permute.xlu1 %958  ;;  %v1003_v41 = vadd.f32 %v995_v63, %v929_v51  ;;  %v2428_v15 = vpop.permute.xlu0 %1258 }
 0x1c1   : > { %v965_v54 = vsel %vm962_vm7, %v959_v26, %v943_v61  ;;  %v977_v11 = vsel %vm962_vm7, %v943_v61, %v959_v26  ;;  %v892_v51 = vsel %vm888_vm5, %v2308_v19, %v2295_v5  ;;  %v924_v14 = vmul.f32 %v2314_v22, %v904_v45 }
 0x1c2   : > { %v1156_v20 = vadd.f32 %v1148_v3, %v1082_v50  ;;  %v1157_v60 = vadd.f32 %v1149_v57, %v1083_v7  ;;  %v1010_v56 = vadd.f32 %v1002_v6, %v608_v13  ;;  %v996_v12 = vmul.f32 %v2345_v52, %v977_v11  ;;  %v616_v57 = vpop.f32.mrf.mxu0 }
 0x1c3   : > { %v997_v34 = vmul.f32 %v2352_v62, %v965_v54  ;;  %v1011_v33 = vadd.f32 %v1003_v41, %v610_v27  ;;  %v925_v27 = vmul.f32 %v2326_v30, %v892_v51  ;;  %v1079_v53 = vmul.f32 %v2323_v29, %v2185_v25  ;;  %v2662_v51 = vld [vmem:[#allocation10_spill] sm:$0xff] }
 0x1c4   : > { %v2435_v40 = vadd.f32 %v1222_v39, %v1156_v20  ;;  %v2437_v61 = vadd.f32 %v1223_v17, %v1157_v60  ;;  %v1084_v37 = vadd.f32 %v2358_v10, %v1010_v56  ;;  %v1004_v3 = vadd.f32 %v996_v12, %v930_v44  ;;  %v1257_v13 = vpop.permute.xlu1 %1256  ;;  %v620_v39 = vpop.f32.mrf.mxu0  ;;  %v1752_v12 = vld [vmem:[%s2626_s6 + $0x10] ss:$8 sm:$0x3] }
 0x1c5   : > { %v1085_v5 = vadd.f32 %v2364_v2, %v1011_v33  ;;  %v1005_v19 = vadd.f32 %v997_v34, %v931_v49  ;;  %v858_v63 = vadd.f32 %v850_v4, %v2372_v16  ;;  %v1152_v2 = vmul.f32 %v2330_v32, %v2256_v23  ;;  %v945_v24 = vpop.permute.xlu0 %944  ;;  %v2663_v34 = vld [vmem:[#allocation9_spill] sm:$0xff]  ;;  %v2664_v49 = vld [vmem:[#allocation12_spill] sm:$0xff] }
 0x1c6   : > { %v2448_v47 = vadd.f32 %v2380_v55, %v1084_v37  ;;  %v1012_v10 = vadd.f32 %v1004_v3, %v614_v18  ;;  %v859_v17 = vadd.f32 %v851_v1, %v785_v38  ;;  %v622_v28 = vpop.f32.mrf.mxu0  ;;  %v1081_v11 = vmul.f32 %v2323_v29, %v2197_v36  ;;  %v2665_v37 = vld [vmem:[#allocation15_spill] sm:$0xff] }
 0x1c7   : > { %v2453_v8 = vadd.f32 %v1151_v48, %v1085_v5  ;;  %v1013_v59 = vadd.f32 %v1005_v19, %v616_v57  ;;  %v932_v4 = vadd.f32 %v924_v14, %v858_v63  ;;  %v1118_v33 = vsel %vm1114_vm3, %v2663_v34, %v2662_v51  ;;  %v2666_v14 = vld [vmem:[#allocation5_spill] sm:$0xff] }
 0x1c8   : > { %v1086_v55 = vadd.f32 %v2368_v31, %v1012_v10  ;;  %v961_v50 = vpop.permute.xlu1 %960  ;;  %v933_v23 = vadd.f32 %v925_v27, %v859_v17  ;;  %v1080_v31 = vmul.f32 %v2311_v21, %v2194_v35  ;;  %v1134_v35 = vsel %vm1114_vm3, %v2662_v51, %v2663_v34  ;;  %v2667_v10 = vld [vmem:[#allocation6_spill] sm:$0xff]  ;;  %v2668_v63 = vld [vmem:[#allocation13_spill] sm:$0xff] }
 0x1c9   : > { %v1087_v7 = vadd.f32 %v1079_v53, %v1013_v59  ;;  %v966_v25 = vsel %vm962_vm7, %v961_v50, %v945_v24  ;;  %v978_v16 = vsel %vm962_vm7, %v945_v24, %v961_v50  ;;  %v1251_v56 = vpop.permute.xlu0 %1250  ;;  %v1207_v36 = vsel %vm1188_vm6, %v2665_v37, %v2664_v49  ;;  %v2669_v59 = vld [vmem:[#allocation11_spill] sm:$0xff]  ;;  %v2670_v17 = vld [vmem:[#allocation17_spill] sm:$0xff]  ;;  %v2671_v50 = vld [vmem:[#allocation16_spill] sm:$0xff] }
 0x1ca   : > { %v1160_v6 = vadd.f32 %v1152_v2, %v1086_v55  ;;  %v998_v26 = vmul.f32 %v2345_v52, %v978_v16  ;;  %v999_v41 = vmul.f32 %v2352_v62, %v966_v25  ;;  %v1191_v57 = vsel %vm1188_vm6, %v2664_v49, %v2665_v37 }
 0x1cb   : > { %v1161_v18 = vadd.f32 %v1153_v43, %v1087_v7  ;;  %v2484_v5 = vrot.slane %v1752_v12, %v2666_v14  ;;  %v1154_v19 = vmul.f32 %v2330_v32, %v1118_v33  ;;  %v1155_v38 = vmul.f32 %v2333_v0, %v1134_v35  ;;  %v2672_v7 = vld [vmem:[#allocation14_spill] sm:$0xff] }
 0x1cc   : > { %v1006_v45 = vadd.f32 %v998_v26, %v932_v4  ;;  %v1007_v1 = vadd.f32 %v999_v41, %v933_v23  ;;  %v1253_v3 = vpop.permute.xlu1 %1252  ;;  %v1227_v27 = vmul.f32 %v2340_v9, %v1207_v36  ;;  %v2490_v53 = vrot.slane %v1752_v12, %v2667_v10  ;;  %v2673_v10 = vld [vmem:[#allocation4_spill] sm:$0xff] }
 0x1cd   : > { %v1206_v2 = vsel %vm1188_vm6, %v2668_v63, %v2669_v59  ;;  %v1226_v43 = vmul.f32 %v2337_v58, %v1191_v57  ;;  %v1281_v55 = vsel %vm1262_vm8, %v1257_v13, %v2670_v17  ;;  %v1192_v25 = vsel %vm1188_vm6, %v2672_v7, %v2671_v50 }
 0x1ce   : > { %v1014_v54 = vadd.f32 %v1006_v45, %v620_v39  ;;  %v1015_v44 = vadd.f32 %v1007_v1, %v622_v28  ;;  %v1190_v39 = vsel %vm1188_vm6, %v2669_v59, %v2668_v63  ;;  %v1208_v16 = vsel %vm1188_vm6, %v2671_v50, %v2672_v7 }
 0x1cf   : > { %v1265_v4 = vsel %vm1262_vm8, %v2670_v17, %v1257_v13  ;;  %v1235_v26 = vadd.f32 %v1227_v27, %v1161_v18  ;;  %v1280_v23 = vsel %vm1262_vm8, %v1253_v3, %v1251_v56  ;;  %v1224_v28 = vmul.f32 %v2337_v58, %v1190_v39 }
 0x1d0   : > { %v1088_v20 = vadd.f32 %v1080_v31, %v1014_v54  ;;  %v1089_v60 = vadd.f32 %v1081_v11, %v1015_v44  ;;  %v1225_v1 = vmul.f32 %v2340_v9, %v1206_v2  ;;  %v1234_v31 = vadd.f32 %v1226_v43, %v1160_v6  ;;  %v2674_v2 = vld [vmem:[#allocation2_spill] sm:$0xff] }
 0x1d1   : > { %v1301_v54 = vmul.f32 %v2490_v53, %v1281_v55  ;;  %v1228_v44 = vmul.f32 %v2337_v58, %v1192_v25  ;;  %v1229_v12 = vmul.f32 %v2340_v9, %v1208_v16  ;;  %v1300_v51 = vmul.f32 %v2484_v5, %v1265_v4 }
 0x1d2   : > { %v1162_v41 = vadd.f32 %v1154_v19, %v1088_v20  ;;  %v1163_v45 = vadd.f32 %v1155_v38, %v1089_v60  ;;  %v1264_v13 = vsel %vm1262_vm8, %v1251_v56, %v1253_v3  ;;  %v1299_v20 = vmul.f32 %v2490_v53, %v1280_v23 }
 0x1d3   : > { %v1309_v60 = vadd.f32 %v1301_v54, %v1235_v26  ;;  %v1308_v36 = vadd.f32 %v1300_v51, %v1234_v31  ;;  %v1298_v57 = vmul.f32 %v2484_v5, %v1264_v13  ;;  %v1233_v56 = vadd.f32 %v1225_v1, %v2453_v8 }
 0x1d4   : > { %v1236_v33 = vadd.f32 %v1228_v44, %v1162_v41  ;;  %v1237_v35 = vadd.f32 %v1229_v12, %v1163_v45  ;;  %v1232_v3 = vadd.f32 %v1224_v28, %v2448_v47  ;;  %v2675_v41 = vld [vmem:[#allocation3_spill] sm:$0xff] }
 0x1d5   : > { %v1324_v48 = vpop.permute.xlu0 %1323  ;;  %v1307_v27 = vadd.f32 %v1299_v20, %v1233_v56  ;;  %v1341_v63 = vmul.f32 %v2673_v10, %v1309_v60  ;;  %v1340_v7 = vmul.f32 %v2673_v10, %v1308_v36 }
 0x1d6   : > { %v1306_v47 = vadd.f32 %v1298_v57, %v1232_v3 }
 0x1d7   : > { %v1339_v50 = vmul.f32 %v1324_v48, %v1307_v27 }
 0x1d8   : > { %v1338_v28 = vmul.f32 %v1324_v48, %v1306_v47 }
 0x1d9   : > { %v1361_v24 = vpop.permute.xlu1 %1360  ;;  %v1247_v11 = vpop.permute.xlu0 %1246 }
 0x1da   : > { %v1373_v25 = vadd.f32 %v1361_v24, %v1341_v63  ;;  %v1372_v1 = vadd.f32 %v1361_v24, %v1340_v7  ;;  %v1384_v24 = vld [vmem:[%s2624_s4] sm:$0xff] }
 0x1dd   : > { %v1261_v18 = vpop.permute.xlu1 %1260 }
 0x1de   : > { %v1266_v34 = vsel %vm1262_vm8, %v2428_v15, %v1261_v18  ;;  %v1282_v6 = vsel %vm1262_vm8, %v1261_v18, %v2428_v15  ;;  %v1319_v15 = vpop.permute.xlu0 %1318  ;;  %v1381_v18 = vmax.f32 %v1373_v25, 0.0 }
 0x1df   : > { %v1302_v49 = vmul.f32 %v2484_v5, %v1266_v34  ;;  %v1303_v37 = vmul.f32 %v2490_v53, %v1282_v6 }
 0x1e1   : > { %v1310_v14 = vadd.f32 %v1302_v49, %v1236_v33  ;;  %v1311_v19 = vadd.f32 %v1303_v37, %v1237_v35  ;;  %v1249_v38 = vpop.permute.xlu1 %1248  ;;  %v2676_v33 = vmov 0.0   ;;  %v1385_v35 = vld [vmem:[%s2624_s4 + $0x8] sm:$0xff]  ;;  %v1386_v49 = vld [vmem:[%s2624_s4 + $0x10] sm:$0x3] }
 0x1e2   : > { %v1263_v59 = vsel %vm1262_vm8, %v1247_v11, %v1249_v38  ;;  %v1279_v39 = vsel %vm1262_vm8, %v1249_v38, %v1247_v11  ;;  %v1351_v51 = vpop.permute.xlu0 %1350 }
 0x1e3   : > { %v1342_v43 = vmul.f32 %v2674_v2, %v1310_v14  ;;  %v1296_v17 = vmul.f32 %v2484_v5, %v1263_v59  ;;  %v1297_v55 = vmul.f32 %v2490_v53, %v1279_v39  ;;  %v1343_v8 = vmul.f32 %v2674_v2, %v1311_v19  ;;  %v1626_v19 = vld [vmem:[%s2625_s5] sm:$0x3] }
 0x1e5   : > { %v1304_v16 = vadd.f32 %v1296_v17, %v2435_v40  ;;  %v1305_v4 = vadd.f32 %v1297_v55, %v2437_v61  ;;  %v1356_v26 = vpop.permute.xlu1 %1355  ;;  %v1375_v23 = vadd.f32 %v2675_v41, %v1343_v8  ;;  %v1374_v45 = vadd.f32 %v2675_v41, %v1342_v43  ;;  %v2677_v8 = vld [vmem:[#allocation8_spill] sm:$0xff] }
 0x1e6   : > { %v1371_v31 = vadd.f32 %v1356_v26, %v1339_v50  ;;  %v1370_v13 = vadd.f32 %v1356_v26, %v1338_v28  ;;  %v1380_v40 = vmax.f32 %v1372_v1, 0.0  ;;  %v2678_v28 = vld [vmem:[#allocation7_spill] sm:$0xff] }
 0x1e7   : > { %v1336_v54 = vmul.f32 %v1319_v15, %v1304_v16  ;;  %v1337_v11 = vmul.f32 %v1319_v15, %v1305_v4  ;;  %v1383_v44 = vmax.f32 %v1375_v23, 0.0  ;;  %v1382_v12 = vmax.f32 %v1374_v45, 0.0 }
 0x1e8   : > { %v1379_v61 = vmax.f32 %v1371_v31, 0.0  ;;  %v1378_v34 = vmax.f32 %v1370_v13, 0.0 }
 0x1e9   : > { %v1369_v20 = vadd.f32 %v1351_v51, %v1337_v11  ;;  %1421 = vmatprep.subr.mxu1 %v1383_v44  ;;  %v1368_v60 = vadd.f32 %v1351_v51, %v1336_v54 }
 0x1ea   : > { %1422 = vmatpush1.msra.mxu1 %v1382_v12 }
 0x1eb   : > { %1423 = vmatprep.subr.mxu1 %v1381_v18  ;;  %v1377_v6 = vmax.f32 %v1369_v20, 0.0  ;;  %v1376_v48 = vmax.f32 %v1368_v60, 0.0 }
 0x1ec   : > { %1424 = vmatpush1.msra.mxu1 %v1380_v40 }
 0x1ed   : > { %1425 = vmatprep.subr.mxu1 %v1379_v61 }
 0x1ee   : > { %1426 = vmatpush1.msra.mxu1 %v1378_v34 }
 0x1ef   : > { %1427 = vmatprep.subr.mxu1 %v1377_v6 }
 0x1f0   : > { %1428 = vmatpush1.msra.mxu1 %v1376_v48 }
 0x1f1   : > { %1753 = vmatmul.mubr.msk.f32.vlgmr.msra.gmra.mxu1 %vm1387_vm9, %v1384_v24 }
 0x1f2   : > { %1467 = vmatprep.mubr.f32.mxu1 %v2676_v33 }
 0x1f5   : > { %1754 = vmatmul.mubr.msk.f32.gmra.mxu1 %vm1387_vm9, %v1385_v35 }
 0x1f6   : > { %1473 = vmatprep.mubr.f32.mxu1 %v2676_v33 }
 0x1f9   : > { %1755 = vmatmul.mubr.msk.f32.gmra.mxu1 %vm1387_vm9, %v1386_v49 }
 0x2b1   : > { %v1463_v37 = vpop.f32.mrf.mxu1 }
 0x2b2   : > { %1496 = vrot.lane.b32.xlu0 %v1463_v37, %s1809_s26 }
 0x2b3   : > { %v1465_v36 = vpop.f32.mrf.mxu1 }
 0x2b4   : > { %1493 = vrot.lane.b32.xlu1 %v1465_v36, %s1809_s26  ;;  %s1760_s26 = sshll.u32 %s2680_s25, 2 }
 0x2b5   : > { %v2555_v57 = vpop.f32.mrf.mxu1 }
 0x2b6   : > { %1485 = vrot.lane.b32.xlu0 %v1463_v37, %s1808_s23 }
 0x2b7   : > { %v2559_v56 = vpop.f32.mrf.mxu1 }
 0x2b8   : > { %1481 = vrot.lane.b32.xlu1 %v1465_v36, %s1808_s23 }
 0x2b9   : > { %v1475_v3 = vpop.f32.mrf.mxu1 }
 0x2ba   : > { %1515 = vrot.lane.b32.xlu0 %v1463_v37, %s1812_s29 }
 0x2bb   : > { %v1477_v14 = vpop.f32.mrf.mxu1 }
 0x2bc   : > { %1512 = vrot.lane.b32.xlu1 %v1465_v36, %s1812_s29  ;;  %s278_s29 = scalar_lea.vmem %s2627_s7, %s1760_s26 }
 0x2be   : > { %1534 = vrot.lane.b32.xlu0 %v1463_v37, %s1813_s30 }
 0x2c0   : > { %1531 = vrot.lane.b32.xlu1 %v1465_v36, %s1813_s30 }
 0x2c2   : > { %1556 = vrot.lane.b32.xlu0 %v2559_v56, %s1807_s22 }
 0x2c4   : > { %1554 = vrot.lane.b32.xlu1 %v2555_v57, %s1807_s22 }
 0x2c6   : > { %1575 = vrot.lane.b32.xlu0 %v2559_v56, %s1810_s27 }
 0x2c8   : > { %1573 = vrot.lane.b32.xlu1 %v2555_v57, %s1810_s27 }
 0x2ca   : > { %1594 = vrot.lane.b32.xlu0 %v2559_v56, %s1811_s28 }
 0x2cc   : > { %1592 = vrot.lane.b32.xlu1 %v2555_v57, %s1811_s28 }
 0x2ce   : > { %1615 = vrot.lane.b32.xlu0 %v1477_v14, %s1814_s8 }
 0x2d0   : > { %1613 = vrot.lane.b32.xlu1 %v1475_v3, %s1814_s8 }
 0x2d4   : > { %1629 = vperm.xlu1 %1796, %v1626_v19  }
 0x324   : > { %v1497_v38 = vpop.permute.xlu0 %1496 }
 0x326   : > { %v1494_v27 = vpop.permute.xlu1 %1493 }
 0x327   : > { %v1498_v39 = vsel %vm814_vm4, %v1497_v38, %v1494_v27  ;;  %v1501_v2 = vsel %vm814_vm4, %v1494_v27, %v1497_v38 }
 0x328   : > { %v1486_v10 = vpop.permute.xlu0 %1485  ;;  %v1502_v47 = vmul.f32 %v1501_v2, %v2677_v8  ;;  %v1503_v50 = vmul.f32 %v1498_v39, %v2221_v46 }
 0x32a   : > { %v1482_v63 = vpop.permute.xlu1 %1481  ;;  %v1506_v44 = vrot.slane %v1502_v47, 2  ;;  %v1507_v12 = vrot.slane %v1503_v50, 2 }
 0x32b   : > { %v1487_v7 = vsel %vm749_vm2, %v1486_v10, %v1482_v63  ;;  %v1490_v25 = vsel %vm749_vm2, %v1482_v63, %v1486_v10 }
 0x32c   : > { %v1516_v15 = vpop.permute.xlu0 %1515  ;;  %v1491_v1 = vmul.f32 %v1490_v25, %v2678_v28  ;;  %v1492_v31 = vmul.f32 %v1487_v7, %v2209_v42 }
 0x32e   : > { %v1513_v59 = vpop.permute.xlu1 %1512  ;;  %v1511_v18 = vadd.f32 %v1507_v12, %v1492_v31 }
 0x32f   : > { %v1517_v43 = vsel %vm888_vm5, %v1516_v15, %v1513_v59  ;;  %v1520_v17 = vsel %vm888_vm5, %v1513_v59, %v1516_v15 }
 0x330   : > { %v1535_v55 = vpop.permute.xlu0 %1534  ;;  %v1521_v4 = vmul.f32 %v1520_v17, %v2314_v22  ;;  %v1522_v26 = vmul.f32 %v1517_v43, %v2326_v30  ;;  %v1510_v30 = vadd.f32 %v1506_v44, %v1491_v1 }
 0x332   : > { %v1532_v16 = vpop.permute.xlu1 %1531  ;;  %v1525_v51 = vrot.slane %v1521_v4, 4  ;;  %v1526_v22 = vrot.slane %v1522_v26, 4 }
 0x333   : > { %v1536_v41 = vsel %vm962_vm7, %v1535_v55, %v1532_v16  ;;  %v1539_v23 = vsel %vm962_vm7, %v1532_v16, %v1535_v55 }
 0x334   : > { %v1557_v45 = vpop.permute.xlu0 %1556  ;;  %v1540_v46 = vmul.f32 %v1539_v23, %v2345_v52  ;;  %v1541_v54 = vmul.f32 %v1536_v41, %v2352_v62  ;;  %v1529_v61 = vadd.f32 %v1525_v51, %v1510_v30  ;;  %v1530_v34 = vadd.f32 %v1526_v22, %v1511_v18 }
 0x336   : > { %v1555_v11 = vpop.permute.xlu1 %1554  ;;  %v1544_v20 = vrot.slane %v1540_v46, 6  ;;  %v1545_v40 = vrot.slane %v1541_v54, 6 }
 0x337   : > { %v1558_v6 = vsel %vm1040_vm1, %v1555_v11, %v1557_v45  ;;  %v1562_v42 = vsel %vm1040_vm1, %v1557_v45, %v1555_v11 }
 0x338   : > { %v1576_v13 = vpop.permute.xlu0 %1575  ;;  %v1548_v52 = vadd.f32 %v1544_v20, %v1529_v61  ;;  %v1549_v48 = vadd.f32 %v1545_v40, %v1530_v34  ;;  %v1563_v33 = vmul.f32 %v1558_v6, %v2311_v21  ;;  %v1564_v35 = vmul.f32 %v1562_v42, %v2323_v29 }
 0x33a   : > { %v1574_v60 = vpop.permute.xlu1 %1573  ;;  %v1550_v38 = vadd.f32 %v1548_v52, %v2555_v57  ;;  %v1551_v27 = vadd.f32 %v1549_v48, %v2559_v56  ;;  %v1567_v10 = vrot.slane %v1563_v33, 2  ;;  %v1568_v63 = vrot.slane %v1564_v35, 2 }
 0x33b   : > { %v1577_v62 = vsel %vm1114_vm3, %v1574_v60, %v1576_v13  ;;  %v1581_v24 = vsel %vm1114_vm3, %v1576_v13, %v1574_v60 }
 0x33c   : > { %v1595_v37 = vpop.permute.xlu0 %1594  ;;  %v1582_v14 = vmul.f32 %v1577_v62, %v2330_v32  ;;  %v1583_v19 = vmul.f32 %v1581_v24, %v2333_v0  ;;  %v1571_v43 = vadd.f32 %v1567_v10, %v1550_v38  ;;  %v1572_v17 = vadd.f32 %v1568_v63, %v1551_v27 }
 0x33e   : > { %v1593_v49 = vpop.permute.xlu1 %1592  ;;  %v1586_v15 = vrot.slane %v1582_v14, 4  ;;  %v1587_v59 = vrot.slane %v1583_v19, 4 }
 0x33f   : > { %v1596_v36 = vsel %vm1188_vm6, %v1593_v49, %v1595_v37  ;;  %v1600_v3 = vsel %vm1188_vm6, %v1595_v37, %v1593_v49 }
 0x340   : > { %v1601_v21 = vmul.f32 %v1596_v36, %v2337_v58  ;;  %v1602_v29 = vmul.f32 %v1600_v3, %v2340_v9  ;;  %v1616_v2 = vpop.permute.xlu0 %1615  ;;  %v1590_v56 = vadd.f32 %v1586_v15, %v1571_v43  ;;  %v1591_v8 = vadd.f32 %v1587_v59, %v1572_v17 }
 0x342   : > { %v1614_v39 = vpop.permute.xlu1 %1613  ;;  %v1605_v32 = vrot.slane %v1601_v21, 6  ;;  %v1606_v55 = vrot.slane %v1602_v29, 6 }
 0x343   : > { %v1617_v0 = vsel %vm1262_vm8, %v1614_v39, %v1616_v2  ;;  %v1621_v57 = vsel %vm1262_vm8, %v1616_v2, %v1614_v39 }
 0x344   : > { %v1622_v47 = vmul.f32 %v1617_v0, %v2484_v5  ;;  %v1623_v58 = vmul.f32 %v1621_v57, %v2490_v53  ;;  %v1609_v9 = vadd.f32 %v1605_v32, %v1590_v56  ;;  %v1610_v50 = vadd.f32 %v1606_v55, %v1591_v8 }
 0x346   : > { %v1624_v7 = vadd.f32 %v1622_v47, %v1609_v9  ;;  %v1625_v25 = vadd.f32 %v1623_v58, %v1610_v50 }
 0x34f   : > { %v1630_v16 = vpop.permute.xlu1 %1629 }
 0x350   : > { %v1632_v4 = vadd.f32 %v1630_v16, %v1624_v7  ;;  %v1633_v26 = vadd.f32 %v1630_v16, %v1625_v25 }
 0x352   : > { %v1636_v41 = vcombine.low %v1632_v4, %v1633_v26 }
 0x354   : > { %1756 = vst.sshfl [vmem:[%s278_s29] sm:$0x33 pattern:$0x76325410] %v1636_v41 }
 0x355 PF: > { %s17_s24 = sadd.s32 1, %s1803_s24  }
 0x356   : > { %p14_p4 = scmp.ge.s32.totalorder %s17_s24, 4  }
 0x358   :  { %16 = sbr.rel (!%p14_p4) target bundleno = 1 (0x1), region = 85 }

</bundles_post_ra>
